<compile_context>
chip_gen: v5e
topology: v5e:2x2
jax: 0.10.0
libtpu: 0.0.40
codegen_flags: <defaults>
</compile_context>

<pallas_src>
import functools

import jax
import jax.numpy as jnp
from jax.experimental import pallas as pl
from jax.experimental.pallas import tpu as pltpu

LANES = 128


def _round_up(v, m):
    return ((v + m - 1) // m) * m


# ----------------------------- Pallas kernel --------------------------------
def multimodel_kernel(x_ref, patches_ref, convw_ref, w1x_ref, wstack_ref, bias_ref,
                      out_ref, pooled_acc, *, chunk):
    """One batch tile of BN samples.

    x_ref       : (BN, 128)      f32   tabular features, zero-padded to 128 lanes
    patches_ref : (BN, P, K)     bf16  im2col patches (K = 9*C_in), P = H*W
    convw_ref   : (K, 128)       bf16  conv weight, C_out padded to 128
    w1x_ref     : (128, 128)     f32   W1 rows acting on x (kept f32 for precision)
    wstack_ref  : (3, 128, 128)  bf16  [fc_w, w1f, w2], zero-padded to 128x128
    bias_ref    : (4, 128)       f32   [conv_b, fc_b, b1, b2], zero-padded
    out_ref     : (BN, 128)      f32   lane-dense output; column 0 is the result
    pooled_acc  : (BN, 128)      f32   VMEM scratch: running sum of ReLU(conv)
    """
    BN, P, K = patches_ref.shape
    n_chunks = P // chunk
    conv_b = bias_ref[0:1, :]                       # hoisted out of the chunk loop

    # --- cnn: conv (im2col matmul) + bias + ReLU + global-avg-pool, chunked ---
    pooled_acc[...] = jnp.zeros_like(pooled_acc)

    def conv_pool_chunk(c, carry):
        s = pl.multiple_of(c * chunk, chunk)        # sublane-aligned chunk start
        slab = patches_ref[:, pl.ds(s, chunk), :].reshape(BN * chunk, K)
        h = jnp.dot(slab, convw_ref[...], preferred_element_type=jnp.float32)
        h = jnp.maximum(h + conv_b, 0.0)            # (BN*chunk, 128) f32
        pooled_acc[...] += jnp.sum(h.reshape(BN, chunk, LANES), axis=1)
        return carry

    jax.lax.fori_loop(0, n_chunks, conv_pool_chunk, 0)
    pooled = pooled_acc[...] * (1.0 / P)            # (BN, 128) f32 mean-pool

    # --- cnn head: Linear + ReLU -> features ---
    feat = jnp.dot(pooled.astype(jnp.bfloat16), wstack_ref[0],
                   preferred_element_type=jnp.float32) + bias_ref[1:2, :]
    feat = jnp.maximum(feat, 0.0)                   # (BN, 128)

    # --- ffn layer 1: Linear(cat(x, feat)) == x @ W1x + feat @ W1f, then ReLU ---
    hid = (jnp.dot(x_ref[...], w1x_ref[...], preferred_element_type=jnp.float32)
           + jnp.dot(feat.astype(jnp.bfloat16), wstack_ref[1],
                     preferred_element_type=jnp.float32)
           + bias_ref[2:3, :])
    hid = jnp.maximum(hid, 0.0)                     # (BN, 128)

    # --- ffn output layer (lane-dense store; column 0 carries the answer) ---
    out_ref[...] = (jnp.dot(hid.astype(jnp.bfloat16), wstack_ref[2],
                            preferred_element_type=jnp.float32)
                    + bias_ref[3:4, :])


# ------------------------------ Wrapper helpers ------------------------------
def im2col_3x3_pad1_nhwc(proj, dtype=jnp.bfloat16):
    """(N, C, H, W) -> (N, H*W, 9*C) patches, column order (di*3+dj)*C + c.

    Cast + NHWC transpose happen on the raw-sized image, so the 9x expansion is
    built (and written) exactly once, already in bf16."""
    N, C, H, W = proj.shape
    x = jnp.transpose(proj.astype(dtype), (0, 2, 3, 1))          # NHWC, raw size
    xp = jnp.pad(x, ((0, 0), (1, 1), (1, 1), (0, 0)))
    taps = [xp[:, di:di + H, dj:dj + W, :] for di in range(3) for dj in range(3)]
    return jnp.concatenate(taps, axis=-1).reshape(N, H * W, 9 * C)


def conv_weight_matrix(conv_w_t):
    """torch Conv2d weight (C_out, C_in, 3, 3) -> (9*C_in, C_out) matrix whose row
    order matches the (di, dj, c) column order of im2col_3x3_pad1_nhwc."""
    return jnp.transpose(conv_w_t, (2, 3, 1, 0)).reshape(-1, conv_w_t.shape[0])


def _pad2(a, rows, cols):
    """Zero-pad a 2-D array up to (rows, cols)."""
    return jnp.zeros((rows, cols), a.dtype).at[:a.shape[0], :a.shape[1]].set(a)


def _vmem_limit_bytes():
    kind = ""
    try:
        kind = jax.devices()[0].device_kind.lower()
    except Exception:
        pass
    if any(g in kind for g in ("v3", "v4", "v5", "v6")):
        return 64 * 1024 * 1024        # 128 MiB physical VMEM on these generations
    return 48 * 1024 * 1024            # v7x has 64 MiB physical; unknown -> conservative


def _pick_bn(N, P, vmem_budget):
    """Batch-tile size.  Budget the patches stream at its 128-lane padded VMEM
    footprint (not K) with double buffering, leaving ~half the budget for the
    per-chunk f32 activation, output tiles and weights."""
    n8 = _round_up(max(N, 1), 8)
    per_sample = P * LANES * 2                      # bf16, lane-padded in VMEM
    cap = (vmem_budget // 2) // (2 * per_sample)    # /2 headroom, x2 double buffer
    bn = max(8, min(256, (cap // 8) * 8, n8))
    # Keep >=4 grid steps on large batches so ("parallel",) can shard across the
    # two v7x TensorCores, without shrinking tiles below 64 samples.
    if n8 >= 4 * 64:
        bn = min(bn, max(64, _round_up(-(-n8 // 4), 8)))
    return bn


def _pick_chunk(P, BN, max_rows=16384):
    """Largest spatial chunk (multiple of 8 dividing P) with <= max_rows patch
    rows per conv matmul, so the f32 conv activation stays a few MiB."""
    if P % 8 != 0:
        return P                                     # fallback: single chunk
    chunk = 8
    for c in range(8, P + 1, 8):
        if P % c == 0 and BN * c <= max_rows:
            chunk = c
    return chunk


# --------------------------------- Forward -----------------------------------
def multimodel_forward(x, projections, params):
    N, C_in, H, W = projections.shape
    P = H * W
    K = 9 * C_in

    vmem_limit = _vmem_limit_bytes()
    BN = _pick_bn(N, P, vmem_limit)
    CH = _pick_chunk(P, BN)
    N_pad = _round_up(N, BN)
    grid = (N_pad // BN,)

    # im2col in bf16 on the raw image (single expansion pass; layout glue only).
    patches = im2col_3x3_pad1_nhwc(projections)                   # (N, P, K) bf16
    if N_pad != N:
        patches = jnp.pad(patches, ((0, N_pad - N), (0, 0), (0, 0)))

    # ---- pack / pad parameters (tiny; done once per call) ----
    conv_w = _pad2(conv_weight_matrix(params["conv_w_t"]).astype(jnp.bfloat16),
                   K, LANES)                                      # (K, 128) bf16
    w1x = _pad2(params["w1x"].astype(jnp.float32), LANES, LANES)  # (128,128) f32
    wstack = jnp.stack([
        _pad2(params["fc_w"].astype(jnp.bfloat16), LANES, LANES),
        _pad2(params["w1f"].astype(jnp.bfloat16), LANES, LANES),
        _pad2(params["w2"].astype(jnp.bfloat16), LANES, LANES),
    ])                                                            # (3,128,128) bf16
    biases = jnp.stack([
        _pad2(params["conv_b"].astype(jnp.float32), 1, LANES)[0],
        _pad2(params["fc_b"].astype(jnp.float32), 1, LANES)[0],
        _pad2(params["b1"].astype(jnp.float32), 1, LANES)[0],
        _pad2(params["b2"].astype(jnp.float32), 1, LANES)[0],
    ])                                                            # (4,128) f32
    x_pad = _pad2(x.astype(jnp.float32), N_pad, LANES)            # (N_pad,128) f32

    kernel = functools.partial(multimodel_kernel, chunk=CH)
    out_padded = pl.pallas_call(
        kernel,
        out_shape=jax.ShapeDtypeStruct((N_pad, LANES), jnp.float32),
        grid=grid,
        in_specs=[
            pl.BlockSpec((BN, LANES), lambda i: (i, 0)),              # x (f32)
            pl.BlockSpec((BN, P, K), lambda i: (i, 0, 0)),            # patches (dominant)
            pl.BlockSpec((K, LANES), lambda i: (0, 0)),               # conv_w (resident)
            pl.BlockSpec((LANES, LANES), lambda i: (0, 0)),           # w1x (resident, f32)
            pl.BlockSpec((3, LANES, LANES), lambda i: (0, 0, 0)),     # weight stack
            pl.BlockSpec((4, LANES), lambda i: (0, 0)),               # bias stack
        ],
        out_specs=pl.BlockSpec((BN, LANES), lambda i: (i, 0)),
        scratch_shapes=[pltpu.VMEM((BN, LANES), jnp.float32)],        # pooled accumulator
        compiler_params=pltpu.CompilerParams(
            dimension_semantics=("parallel",),        # megacore / v7x 2-TC sharding
            vmem_limit_bytes=vmem_limit,              # per-generation budget
        ),
    )(x_pad, patches, conv_w, w1x, wstack, biases)

    return out_padded[:N, :1]                                      # (N, 1)


# ------------------------- Pure-JAX/XLA reference -----------------------------
def multimodel_reference(x, projections, params):
    h = jax.lax.conv_general_dilated(
        projections, params["conv_w_t"], window_strides=(1, 1), padding="SAME",
        dimension_numbers=("NCHW", "OIHW", "NCHW"))
    h = jnp.maximum(h + params["conv_b"].reshape(1, -1, 1, 1), 0.0)
    pooled = h.mean(axis=(2, 3))                                   # (N, C_out)
    feat = jnp.maximum(pooled @ params["fc_w"] + params["fc_b"], 0.0)
    nn_inputs = jnp.concatenate([x, feat], axis=1)                 # torch.cat((x, features), 1)
    w1 = jnp.concatenate([params["w1x"], params["w1f"]], axis=0)
    hid = jnp.maximum(nn_inputs @ w1 + params["b1"], 0.0)
    return hid @ params["w2"] + params["b2"]


# ------------------------------- Main -----------------------------------------
if __name__ == "__main__":
    # small shapes consistent with the forward pass
    N, C_in, H, W = 2, 4, 16, 16     # projections: NCHW
    X_DIM = 8                        # tabular features x
    C_OUT, FEAT, HID, OUT = 8, 16, 32, 1

    key = jax.random.PRNGKey(0)
    ks = jax.random.split(key, 12)

    def init(k, shape, scale=0.1):
        return (scale * jax.random.normal(k, shape)).astype(jnp.float32)

    params = {
        "conv_w_t": init(ks[0], (C_OUT, C_in, 3, 3)),   # torch Conv2d weight layout
        "conv_b":   init(ks[1], (1, C_OUT)),
        "fc_w":     init(ks[2], (C_OUT, FEAT)),         # (in, out) layout
        "fc_b":     init(ks[3], (1, FEAT)),
        "w1x":      init(ks[4], (X_DIM, HID)),          # rows of W1 acting on x
        "w1f":      init(ks[5], (FEAT, HID)),           # rows of W1 acting on features
        "b1":       init(ks[6], (1, HID)),
        "w2":       init(ks[7], (HID, OUT)),
        "b2":       init(ks[8], (1, OUT)),
    }

    x = init(ks[9], (N, X_DIM), scale=1.0)
    projections = init(ks[10], (N, C_in, H, W), scale=1.0)

    out = multimodel_forward(x, projections, params)
    out = jax.block_until_ready(out)

    ref = multimodel_reference(x, projections, params)
    assert out.shape == (N, OUT), out.shape
    # bf16 conv/ffn operands (f32 accumulation, f32 x-path) vs fp32 reference
    assert jnp.allclose(out, ref, atol=2e-2, rtol=2e-2), (out, ref)

    print("KERNEL_OK")
</pallas_src>

<mosaic_0001>
module attributes {stable_mosaic.version = 11 : i64} {
  func.func @multimodel_kernel(%arg0: i32, %arg1: memref<8x128xf32, #tpu.memory_space<vmem>>, %arg2: memref<8x256x36xbf16, #tpu.memory_space<vmem>>, %arg3: memref<36x128xbf16, #tpu.memory_space<vmem>>, %arg4: memref<128x128xf32, #tpu.memory_space<vmem>>, %arg5: memref<3x128x128xbf16, #tpu.memory_space<vmem>>, %arg6: memref<4x128xf32, #tpu.memory_space<vmem>>, %arg7: memref<8x128xf32, #tpu.memory_space<vmem>>, %arg8: memref<8x128xf32, #tpu.memory_space<vmem>>) attributes {dimension_semantics = [#tpu.dimension_semantics<parallel>], iteration_bounds = array<i64: 1>, scalar_prefetch = 0 : i64, scratch_operands = 1 : i64, tpu.core_type = #tpu.core_type<tc>, window_params = [{transform_indices = @transform_0, window_bounds = array<i64: 8, 128>}, {transform_indices = @transform_1, window_bounds = array<i64: 8, 256, 36>}, {pipeline_mode = #tpu.pipeline_mode<synchronous>, transform_indices = @transform_2, window_bounds = array<i64: 36, 128>}, {pipeline_mode = #tpu.pipeline_mode<synchronous>, transform_indices = @transform_3, window_bounds = array<i64: 128, 128>}, {pipeline_mode = #tpu.pipeline_mode<synchronous>, transform_indices = @transform_4, window_bounds = array<i64: 3, 128, 128>}, {pipeline_mode = #tpu.pipeline_mode<synchronous>, transform_indices = @transform_5, window_bounds = array<i64: 4, 128>}, {transform_indices = @transform_6, window_bounds = array<i64: 8, 128>}]} {
    %c0 = arith.constant 0 : index
    %c0_0 = arith.constant 0 : index
    %0 = vector.load %arg6[%c0, %c0_0] : memref<4x128xf32, #tpu.memory_space<vmem>>, vector<1x128xf32>
    %cst = arith.constant 0.000000e+00 : f32
    %1 = vector.broadcast %cst : f32 to vector<8x128xf32>
    %c0_1 = arith.constant 0 : index
    %c0_2 = arith.constant 0 : index
    %2 = vector.load %arg8[%c0_1, %c0_2] : memref<8x128xf32, #tpu.memory_space<vmem>>, vector<8x128xf32>
    tpu.vector_store %arg8[%c0_1, %c0_2], %1 {strides = array<i32>} : memref<8x128xf32, #tpu.memory_space<vmem>>, vector<8x128xf32>,
    %c0_i32 = arith.constant 0 : i32
    %c256_i32 = arith.constant 256 : i32
    %3 = arith.muli %c0_i32, %c256_i32 : i32
    %4 = tpu.assume_multiple %3, 256 : i32
    %c0_3 = arith.constant 0 : index
    %5 = arith.index_cast %4 : i32 to index
    %c0_4 = arith.constant 0 : index
    %6 = vector.load %arg2[%c0_3, %5, %c0_4] : memref<8x256x36xbf16, #tpu.memory_space<vmem>>, vector<8x256x36xbf16>
    %7 = vector.shape_cast %6 : vector<8x256x36xbf16> to vector<2048x36xbf16>
    %c0_5 = arith.constant 0 : index
    %c0_6 = arith.constant 0 : index
    %8 = vector.load %arg3[%c0_5, %c0_6] : memref<36x128xbf16, #tpu.memory_space<vmem>>, vector<36x128xbf16>
    %cst_7 = arith.constant dense<0.000000e+00> : vector<2048x128xf32>
    %9 = tpu.matmul %7, %8, %cst_7 {dimension_numbers = #tpu.dot_dimension_numbers<[1], [0], [0], [1], [0, 0, 1, 1], [], []>} : vector<2048x36xbf16>, vector<36x128xbf16>, vector<2048x128xf32> -> vector<2048x128xf32>
    %10 = vector.broadcast %0 : vector<1x128xf32> to vector<2048x128xf32>
    %11 = arith.addf %9, %10 : vector<2048x128xf32>
    %cst_8 = arith.constant 0.000000e+00 : f32
    %12 = vector.broadcast %cst_8 : f32 to vector<2048x128xf32>
    %13 = arith.maximumf %11, %12 : vector<2048x128xf32>
    %c0_9 = arith.constant 0 : index
    %c0_10 = arith.constant 0 : index
    %14 = vector.load %arg8[%c0_9, %c0_10] : memref<8x128xf32, #tpu.memory_space<vmem>>, vector<8x128xf32>
    %15 = vector.shape_cast %13 : vector<2048x128xf32> to vector<8x256x128xf32>
    %cst_11 = arith.constant dense<0.000000e+00> : vector<8x128xf32>
    %16 = vector.multi_reduction <add>, %15, %cst_11 [1] : vector<8x256x128xf32> to vector<8x128xf32>
    %17 = arith.addf %14, %16 : vector<8x128xf32>
    %c0_12 = arith.constant 0 : index
    %c0_13 = arith.constant 0 : index
    %18 = vector.load %arg8[%c0_12, %c0_13] : memref<8x128xf32, #tpu.memory_space<vmem>>, vector<8x128xf32>
    tpu.vector_store %arg8[%c0_12, %c0_13], %17 {strides = array<i32>} : memref<8x128xf32, #tpu.memory_space<vmem>>, vector<8x128xf32>,
    %c1_i32 = arith.constant 1 : i32
    %c0_14 = arith.constant 0 : index
    %c0_15 = arith.constant 0 : index
    %19 = vector.load %arg8[%c0_14, %c0_15] : memref<8x128xf32, #tpu.memory_space<vmem>>, vector<8x128xf32>
    %cst_16 = arith.constant 3.906250e-03 : f32
    %20 = vector.broadcast %cst_16 : f32 to vector<8x128xf32>
    %21 = arith.mulf %19, %20 : vector<8x128xf32>
    %22 = arith.truncf %21 : vector<8x128xf32> to vector<8x128xbf16>
    %c0_17 = arith.constant 0 : index
    %c0_18 = arith.constant 0 : index
    %c0_19 = arith.constant 0 : index
    %23 = vector.load %arg5[%c0_17, %c0_18, %c0_19] : memref<3x128x128xbf16, #tpu.memory_space<vmem>>, vector<1x128x128xbf16>
    %24 = vector.shape_cast %23 : vector<1x128x128xbf16> to vector<128x128xbf16>
    %cst_20 = arith.constant dense<0.000000e+00> : vector<8x128xf32>
    %25 = tpu.matmul %22, %24, %cst_20 {dimension_numbers = #tpu.dot_dimension_numbers<[1], [0], [0], [1], [0, 0, 1, 1], [], []>} : vector<8x128xbf16>, vector<128x128xbf16>, vector<8x128xf32> -> vector<8x128xf32>
    %c1 = arith.constant 1 : index
    %c0_21 = arith.constant 0 : index
    %26 = vector.load %arg6[%c1, %c0_21] : memref<4x128xf32, #tpu.memory_space<vmem>>, vector<1x128xf32>
    %27 = vector.broadcast %26 : vector<1x128xf32> to vector<8x128xf32>
    %28 = arith.addf %25, %27 : vector<8x128xf32>
    %cst_22 = arith.constant 0.000000e+00 : f32
    %29 = vector.broadcast %cst_22 : f32 to vector<8x128xf32>
    %30 = arith.maximumf %28, %29 : vector<8x128xf32>
    %c0_23 = arith.constant 0 : index
    %c0_24 = arith.constant 0 : index
    %31 = vector.load %arg1[%c0_23, %c0_24] : memref<8x128xf32, #tpu.memory_space<vmem>>, vector<8x128xf32>
    %c0_25 = arith.constant 0 : index
    %c0_26 = arith.constant 0 : index
    %32 = vector.load %arg4[%c0_25, %c0_26] : memref<128x128xf32, #tpu.memory_space<vmem>>, vector<128x128xf32>
    %cst_27 = arith.constant dense<0.000000e+00> : vector<8x128xf32>
    %33 = tpu.matmul %31, %32, %cst_27 {dimension_numbers = #tpu.dot_dimension_numbers<[1], [0], [0], [1], [0, 0, 1, 1], [], []>} : vector<8x128xf32>, vector<128x128xf32>, vector<8x128xf32> -> vector<8x128xf32>
    %34 = arith.truncf %30 : vector<8x128xf32> to vector<8x128xbf16>
    %c1_28 = arith.constant 1 : index
    %c0_29 = arith.constant 0 : index
    %c0_30 = arith.constant 0 : index
    %35 = vector.load %arg5[%c1_28, %c0_29, %c0_30] : memref<3x128x128xbf16, #tpu.memory_space<vmem>>, vector<1x128x128xbf16>
    %36 = vector.shape_cast %35 : vector<1x128x128xbf16> to vector<128x128xbf16>
    %cst_31 = arith.constant dense<0.000000e+00> : vector<8x128xf32>
    %37 = tpu.matmul %34, %36, %cst_31 {dimension_numbers = #tpu.dot_dimension_numbers<[1], [0], [0], [1], [0, 0, 1, 1], [], []>} : vector<8x128xbf16>, vector<128x128xbf16>, vector<8x128xf32> -> vector<8x128xf32>
    %38 = arith.addf %33, %37 : vector<8x128xf32>
    %c2 = arith.constant 2 : index
    %c0_32 = arith.constant 0 : index
    %39 = vector.load %arg6[%c2, %c0_32] : memref<4x128xf32, #tpu.memory_space<vmem>>, vector<1x128xf32>
    %40 = vector.broadcast %39 : vector<1x128xf32> to vector<8x128xf32>
    %41 = arith.addf %38, %40 : vector<8x128xf32>
    %cst_33 = arith.constant 0.000000e+00 : f32
    %42 = vector.broadcast %cst_33 : f32 to vector<8x128xf32>
    %43 = arith.maximumf %41, %42 : vector<8x128xf32>
    %44 = arith.truncf %43 : vector<8x128xf32> to vector<8x128xbf16>
    %c2_34 = arith.constant 2 : index
    %c0_35 = arith.constant 0 : index
    %c0_36 = arith.constant 0 : index
    %45 = vector.load %arg5[%c2_34, %c0_35, %c0_36] : memref<3x128x128xbf16, #tpu.memory_space<vmem>>, vector<1x128x128xbf16>
    %46 = vector.shape_cast %45 : vector<1x128x128xbf16> to vector<128x128xbf16>
    %cst_37 = arith.constant dense<0.000000e+00> : vector<8x128xf32>
    %47 = tpu.matmul %44, %46, %cst_37 {dimension_numbers = #tpu.dot_dimension_numbers<[1], [0], [0], [1], [0, 0, 1, 1], [], []>} : vector<8x128xbf16>, vector<128x128xbf16>, vector<8x128xf32> -> vector<8x128xf32>
    %c3 = arith.constant 3 : index
    %c0_38 = arith.constant 0 : index
    %48 = vector.load %arg6[%c3, %c0_38] : memref<4x128xf32, #tpu.memory_space<vmem>>, vector<1x128xf32>
    %49 = vector.broadcast %48 : vector<1x128xf32> to vector<8x128xf32>
    %50 = arith.addf %47, %49 : vector<8x128xf32>
    %c0_39 = arith.constant 0 : index
    %c0_40 = arith.constant 0 : index
    %51 = vector.load %arg7[%c0_39, %c0_40] : memref<8x128xf32, #tpu.memory_space<vmem>>, vector<8x128xf32>
    tpu.vector_store %arg7[%c0_39, %c0_40], %50 {strides = array<i32>} : memref<8x128xf32, #tpu.memory_space<vmem>>, vector<8x128xf32>,
    return
  }
  func.func @transform_0(%arg0: i32) -> (i32, i32) {
    %c0_i32 = arith.constant 0 : i32
    %c0_i32_0 = arith.constant 0 : i32
    return %arg0, %c0_i32 : i32, i32
  }
  func.func @transform_1(%arg0: i32) -> (i32, i32, i32) {
    %c0_i32 = arith.constant 0 : i32
    %c0_i32_0 = arith.constant 0 : i32
    %c0_i32_1 = arith.constant 0 : i32
    return %arg0, %c0_i32, %c0_i32_0 : i32, i32, i32
  }
  func.func @transform_2(%arg0: i32) -> (i32, i32) {
    %c0_i32 = arith.constant 0 : i32
    %c0_i32_0 = arith.constant 0 : i32
    %c0_i32_1 = arith.constant 0 : i32
    return %c0_i32, %c0_i32_0 : i32, i32
  }
  func.func @transform_3(%arg0: i32) -> (i32, i32) {
    %c0_i32 = arith.constant 0 : i32
    %c0_i32_0 = arith.constant 0 : i32
    %c0_i32_1 = arith.constant 0 : i32
    return %c0_i32, %c0_i32_0 : i32, i32
  }
  func.func @transform_4(%arg0: i32) -> (i32, i32, i32) {
    %c0_i32 = arith.constant 0 : i32
    %c0_i32_0 = arith.constant 0 : i32
    %c0_i32_1 = arith.constant 0 : i32
    %c0_i32_2 = arith.constant 0 : i32
    return %c0_i32, %c0_i32_0, %c0_i32_1 : i32, i32, i32
  }
  func.func @transform_5(%arg0: i32) -> (i32, i32) {
    %c0_i32 = arith.constant 0 : i32
    %c0_i32_0 = arith.constant 0 : i32
    %c0_i32_1 = arith.constant 0 : i32
    return %c0_i32, %c0_i32_0 : i32, i32
  }
  func.func @transform_6(%arg0: i32) -> (i32, i32) {
    %c0_i32 = arith.constant 0 : i32
    %c0_i32_0 = arith.constant 0 : i32
    return %arg0, %c0_i32 : i32, i32
  }
}

</mosaic_0001>

<bundles_post_ra>
// kernel: tpu_custom_call.1
= control target key start
LH: loop header
LB: loop body
LE: loop exit
PB: predicated region body
PF: predicated region fallthrough
CT: control target
= control target key end

     0   :  { %vm1329_vm0 = vcmask 1041408   ;;  %s4966_s0 = inlined_call_operand.vmem [shape: f32[8,128], index: 0, kind: input, shape index: {}]   ;;  %s4967_s1 = inlined_call_operand.vmem [shape: bf16[8,256,36], index: 1, kind: input, shape index: {}]   ;;  %s4968_s2 = inlined_call_operand.vmem [shape: bf16[36,128], index: 2, kind: input, shape index: {}]   ;;  %s4969_s3 = inlined_call_operand.vmem [shape: f32[128,128], index: 3, kind: input, shape index: {}]   ;;  %s4970_s4 = inlined_call_operand.vmem [shape: bf16[3,128,128], index: 4, kind: input, shape index: {}]   ;;  %s4971_s5 = inlined_call_operand.vmem [shape: f32[4,128], index: 5, kind: input, shape index: {}]   ;;  %s4972_s6 = inlined_call_operand.hbm [shape: f32[8,128], index: 6, kind: output, shape index: {}]  }
   0x1   :  { %v287_v0 = vld [vmem:[%s4968_s2 + $0x10] sm:$0x3] }
   0x2   :  { %v938_v1 = vunpack.c.l.b16 %v287_v0 }
   0x4   :  { %v941_v2 = vpack.c.b16 %v938_v1, %v938_v1 }
   0x6   :  { %v1331_v3 = vsel %vm1329_vm0, %v941_v2, 0 }
   0x7   :  { %11 = vsyncpa [#allocation4], 0  ;;  %1338 = vmatpush.bf16.msra.mxu0 %v1331_v3  ;;  %3791 = vmatpush.bf16.msra.mxu1 %v1331_v3  ;;  %v3766_v4 = vld [vmem:[%s4968_s2 + $0x8] sm:$0xff]  ;;  %v3765_v5 = vld [vmem:[%s4968_s2] sm:$0xff]  ;;  %vm944_vm1 = vcmask 293888   ;;  %vm2543_vm2 = vcmask 1041409  }
   0x8   :  { %3792 = vmatpush.bf16.msra.mxu2 %v1331_v3  ;;  %3793 = vmatpush.bf16.msra.mxu3 %v1331_v3  ;;  %v3637_v6 = vld [vmem:[%s4967_s1] sm:$0xff]  ;;  %v3671_v7 = vld [vmem:[%s4967_s1 + $0x110] sm:$0xff]  ;;  %v3732_v9 = vld [vmem:[%s4967_s1 + $0x2f8] sm:$0xff]  ;;  %vm2545_vm3 = vcmask 1042434   ;;  %vm2547_vm4 = vcmask 1043459   ;;  %vm2549_vm5 = vcmask 1044484  }
   0x9   :  { %v3699_v8 = vld [vmem:[%s4967_s1 + $0x1f0] sm:$0xff]  ;;  %v3638_v10 = vld [vmem:[%s4967_s1 + $0x8] sm:$0xff]  ;;  %v3672_v11 = vld [vmem:[%s4967_s1 + $0x118] sm:$0xff]  ;;  %vm2551_vm6 = vcmask 1045509   ;;  %vm2553_vm7 = vcmask 1046534   ;;  %vm2555_vm8 = vcmask 1047559  }
   0xa   :  { %v3700_v12 = vld [vmem:[%s4967_s1 + $0x1f8] sm:$0xff]  ;;  %v3733_v13 = vld [vmem:[%s4967_s1 + $0x300] sm:$0xff]  ;;  %v3639_v14 = vld [vmem:[%s4967_s1 + $0x10] sm:$0xff]  ;;  %s3833_s22 = smov [#allocation3]   ;;  %s2852_s25 = sshll.u32 %s4972_s6, 4  ;;  %s2853_s25 = int_to_ptr.hbm [resolvable:$true] %s2852_s25 }
   0xb   :  { %1339 = vmatpush.bf16.msra.mxu0 %v3766_v4  ;;  %3794 = vmatpush.bf16.msra.mxu1 %v3766_v4  ;;  %v3673_v15 = vld [vmem:[%s4967_s1 + $0x120] sm:$0xff]  ;;  %v3734_v17 = vld [vmem:[%s4967_s1 + $0x308] sm:$0xff]  ;;  %v3640_v18 = vld [vmem:[%s4967_s1 + $0x18] sm:$0xff]  ;;  %s2850_s23 = sshll.u32 %s3833_s22, 4  ;;  %s2851_s23 = int_to_ptr.vmem [resolvable:$true] %s2850_s23 }
   0xc   :  { %3795 = vmatpush.bf16.msra.mxu2 %v3766_v4  ;;  %3796 = vmatpush.bf16.msra.mxu3 %v3766_v4  ;;  %v3701_v16 = vld [vmem:[%s4967_s1 + $0x200] sm:$0xff]  ;;  %v3674_v19 = vld [vmem:[%s4967_s1 + $0x128] sm:$0xff]  ;;  %v3735_v21 = vld [vmem:[%s4967_s1 + $0x310] sm:$0xff] }
   0xd   :  { %v3702_v20 = vld [vmem:[%s4967_s1 + $0x208] sm:$0xff]  ;;  %v3641_v22 = vld [vmem:[%s4967_s1 + $0x20] sm:$0xff]  ;;  %v3675_v23 = vld [vmem:[%s4967_s1 + $0x130] sm:$0xff] }
   0xe   :  { %v3703_v24 = vld [vmem:[%s4967_s1 + $0x210] sm:$0xff]  ;;  %v3736_v25 = vld [vmem:[%s4967_s1 + $0x318] sm:$0xff]  ;;  %v3642_v26 = vld [vmem:[%s4967_s1 + $0x28] sm:$0xff] }
   0xf   :  { %1340 = vmatpush.bf16.msra.mxu0 %v3765_v5  ;;  %3797 = vmatpush.bf16.msra.mxu1 %v3765_v5  ;;  %v3676_v27 = vld [vmem:[%s4967_s1 + $0x138] sm:$0xff]  ;;  %v3737_v29 = vld [vmem:[%s4967_s1 + $0x320] sm:$0xff]  ;;  %v3643_v30 = vld [vmem:[%s4967_s1 + $0x30] sm:$0xff] }
  0x10   :  { %3798 = vmatpush.bf16.msra.mxu2 %v3765_v5  ;;  %3799 = vmatpush.bf16.msra.mxu3 %v3765_v5  ;;  %v3704_v28 = vld [vmem:[%s4967_s1 + $0x218] sm:$0xff]  ;;  %v3677_v31 = vld [vmem:[%s4967_s1 + $0x140] sm:$0xff]  ;;  %v3738_v33 = vld [vmem:[%s4967_s1 + $0x328] sm:$0xff] }
  0x11   :  { %v3705_v32 = vld [vmem:[%s4967_s1 + $0x220] sm:$0xff]  ;;  %v3644_v34 = vld [vmem:[%s4967_s1 + $0x38] sm:$0xff]  ;;  %v3678_v35 = vld [vmem:[%s4967_s1 + $0x148] sm:$0xff] }
  0x12   :  { %3381 = vmatmul.msk.bf16.vlgmr.msra.gmra.mxu0 %vm944_vm1, %v3637_v6  ;;  %3415 = vmatmul.msk.bf16.vlgmr.msra.gmra.mxu1 %vm944_vm1, %v3671_v7  ;;  %v3706_v36 = vld [vmem:[%s4967_s1 + $0x228] sm:$0xff]  ;;  %v3739_v37 = vld [vmem:[%s4967_s1 + $0x330] sm:$0xff]  ;;  %v3645_v38 = vld [vmem:[%s4967_s1 + $0x40] sm:$0xff] }
  0x13   :  { %3443 = vmatmul.msk.bf16.vlgmr.msra.gmra.mxu2 %vm944_vm1, %v3699_v8  ;;  %3476 = vmatmul.msk.bf16.vlgmr.msra.gmra.mxu3 %vm944_vm1, %v3732_v9  ;;  %v3679_v39 = vld [vmem:[%s4967_s1 + $0x150] sm:$0xff]  ;;  %v3740_v43 = vld [vmem:[%s4967_s1 + $0x338] sm:$0xff]  ;;  %v4023_v44 = vld [vmem:[%s4971_s5] ss:$0 sm:$0xff] }
  0x14   :  { %v3707_v42 = vld [vmem:[%s4967_s1 + $0x230] sm:$0xff]  ;;  %v3646_v56 = vld [vmem:[%s4967_s1 + $0x48] sm:$0xff]  ;;  %v3680_v57 = vld [vmem:[%s4967_s1 + $0x158] sm:$0xff] }
  0x15   :  { %v3708_v60 = vld [vmem:[%s4967_s1 + $0x238] sm:$0xff]  ;;  %v3741_v61 = vld [vmem:[%s4967_s1 + $0x340] sm:$0xff] }
  0x22   :  { %3382 = vmatmul.msk.bf16.gmra.mxu0 %vm944_vm1, %v3638_v10  ;;  %3416 = vmatmul.msk.bf16.gmra.mxu1 %vm944_vm1, %v3672_v11  ;;  %v3647_v11 = vld [vmem:[%s4967_s1 + $0x50] sm:$0xff] }
  0x23   :  { %3444 = vmatmul.msk.bf16.gmra.mxu2 %vm944_vm1, %v3700_v12  ;;  %3477 = vmatmul.msk.bf16.gmra.mxu3 %vm944_vm1, %v3733_v13  ;;  %v3681_v12 = vld [vmem:[%s4967_s1 + $0x160] sm:$0xff] }
  0x32   :  { %3383 = vmatmul.msk.bf16.gmra.mxu0 %vm944_vm1, %v3639_v14  ;;  %3417 = vmatmul.msk.bf16.gmra.mxu1 %vm944_vm1, %v3673_v15 }
  0x33   :  { %3445 = vmatmul.msk.bf16.gmra.mxu2 %vm944_vm1, %v3701_v16  ;;  %3478 = vmatmul.msk.bf16.gmra.mxu3 %vm944_vm1, %v3734_v17  ;;  %v3709_v17 = vld [vmem:[%s4967_s1 + $0x240] sm:$0xff] }
  0x42   :  { %3384 = vmatmul.msk.bf16.gmra.mxu0 %vm944_vm1, %v3640_v18  ;;  %3418 = vmatmul.msk.bf16.gmra.mxu1 %vm944_vm1, %v3674_v19  ;;  %v3742_v18 = vld [vmem:[%s4967_s1 + $0x348] sm:$0xff] }
  0x43   :  { %3446 = vmatmul.msk.bf16.gmra.mxu2 %vm944_vm1, %v3702_v20  ;;  %3479 = vmatmul.msk.bf16.gmra.mxu3 %vm944_vm1, %v3735_v21 }
  0x52   :  { %3385 = vmatmul.msk.bf16.gmra.mxu0 %vm944_vm1, %v3641_v22  ;;  %3419 = vmatmul.msk.bf16.gmra.mxu1 %vm944_vm1, %v3675_v23 }
  0x53   :  { %3447 = vmatmul.msk.bf16.gmra.mxu2 %vm944_vm1, %v3703_v24  ;;  %3480 = vmatmul.msk.bf16.gmra.mxu3 %vm944_vm1, %v3736_v25 }
  0x62   :  { %3386 = vmatmul.msk.bf16.gmra.mxu0 %vm944_vm1, %v3642_v26  ;;  %3420 = vmatmul.msk.bf16.gmra.mxu1 %vm944_vm1, %v3676_v27 }
  0x63   :  { %3448 = vmatmul.msk.bf16.gmra.mxu2 %vm944_vm1, %v3704_v28  ;;  %3481 = vmatmul.msk.bf16.gmra.mxu3 %vm944_vm1, %v3737_v29 }
  0x72   :  { %3387 = vmatmul.msk.bf16.gmra.mxu0 %vm944_vm1, %v3643_v30  ;;  %3421 = vmatmul.msk.bf16.gmra.mxu1 %vm944_vm1, %v3677_v31 }
  0x73   :  { %3449 = vmatmul.msk.bf16.gmra.mxu2 %vm944_vm1, %v3705_v32  ;;  %3482 = vmatmul.msk.bf16.gmra.mxu3 %vm944_vm1, %v3738_v33 }
  0x82   :  { %3388 = vmatmul.msk.bf16.gmra.mxu0 %vm944_vm1, %v3644_v34  ;;  %3422 = vmatmul.msk.bf16.gmra.mxu1 %vm944_vm1, %v3678_v35 }
  0x83   :  { %3450 = vmatmul.msk.bf16.gmra.mxu2 %vm944_vm1, %v3706_v36  ;;  %3483 = vmatmul.msk.bf16.gmra.mxu3 %vm944_vm1, %v3739_v37  ;;  %v3648_v37 = vld [vmem:[%s4967_s1 + $0x58] sm:$0xff] }
  0x8f   :  { %v1342_v40 = vpop.f32.mrf.mxu0  ;;  %v4012_v41 = vpop.f32.mrf.mxu1 }
  0x90   :  { %v1343_v45 = vadd.f32 %v4023_v44, %v1342_v40 }
  0x92   :  { %3389 = vmatmul.msk.bf16.gmra.mxu0 %vm944_vm1, %v3645_v38  ;;  %3423 = vmatmul.msk.bf16.gmra.mxu1 %vm944_vm1, %v3679_v39  ;;  %v1982_v51 = vmax.f32 %v1343_v45, 0.0  ;;  %v3682_v38 = vld [vmem:[%s4967_s1 + $0x168] sm:$0xff] }
  0x93   :  { %3451 = vmatmul.msk.bf16.gmra.mxu2 %vm944_vm1, %v3707_v42  ;;  %3484 = vmatmul.msk.bf16.gmra.mxu3 %vm944_vm1, %v3740_v43 }
  0x96   :  { %v4030_v46 = vpop.f32.mrf.mxu2  ;;  %v4032_v47 = vpop.f32.mrf.mxu3 }
  0x97   :  { %v1344_v48 = vpop.f32.mrf.mxu0  ;;  %v4034_v49 = vpop.f32.mrf.mxu1 }
  0x98   :  { %v1345_v50 = vadd.f32 %v4023_v44, %v1344_v48  ;;  %v3710_v48 = vld [vmem:[%s4967_s1 + $0x248] sm:$0xff] }
  0x9a   :  { %v1983_v52 = vmax.f32 %v1345_v50, 0.0  ;;  %v3743_v50 = vld [vmem:[%s4967_s1 + $0x350] sm:$0xff] }
  0x9c   :  { %v2239_v53 = vadd.f32 %v1983_v52, %v1982_v51 }
  0x9e   :  { %v4037_v54 = vpop.f32.mrf.mxu2  ;;  %v4039_v55 = vpop.f32.mrf.mxu3 }
  0x9f   :  { %v1347_v58 = vpop.f32.mrf.mxu0  ;;  %v4047_v59 = vpop.f32.mrf.mxu1 }
  0xa0   :  { %v1348_v62 = vadd.f32 %v4023_v44, %v1347_v58 }
  0xa2   :  { %v1984_v63 = vmax.f32 %v1348_v62, 0.0  ;;  %3390 = vmatmul.msk.bf16.gmra.mxu0 %vm944_vm1, %v3646_v56  ;;  %3424 = vmatmul.msk.bf16.gmra.mxu1 %vm944_vm1, %v3680_v57 }
  0xa3   :  { %3452 = vmatmul.msk.bf16.gmra.mxu2 %vm944_vm1, %v3708_v60  ;;  %3485 = vmatmul.msk.bf16.gmra.mxu3 %vm944_vm1, %v3741_v61 }
  0xa4   :  { %v2240_v0 = vadd.f32 %v2239_v53, %v1984_v63 }
  0xa6   :  { %v4060_v1 = vpop.f32.mrf.mxu2  ;;  %v1822_v2 = vpop.f32.mrf.mxu3 }
  0xa7   :  { %v1349_v3 = vpop.f32.mrf.mxu0  ;;  %v4062_v4 = vpop.f32.mrf.mxu1  ;;  %v1823_v7 = vadd.f32 %v4023_v44, %v1822_v2 }
  0xa8   :  { %v1350_v5 = vadd.f32 %v4023_v44, %v1349_v3 }
  0xa9   :  { %v2174_v13 = vmax.f32 %v1823_v7, 0.0 }
  0xaa   :  { %v1985_v6 = vmax.f32 %v1350_v5, 0.0 }
  0xac   :  { %v2241_v8 = vadd.f32 %v2240_v0, %v1985_v6 }
  0xae   :  { %v4066_v9 = vpop.f32.mrf.mxu2  ;;  %v1824_v10 = vpop.f32.mrf.mxu3 }
  0xaf   :  { %v1825_v14 = vadd.f32 %v4023_v44, %v1824_v10  ;;  %v1352_v15 = vpop.f32.mrf.mxu0  ;;  %v4075_v16 = vpop.f32.mrf.mxu1 }
  0xb0   :  { %v1353_v19 = vadd.f32 %v4023_v44, %v1352_v15  ;;  %v3649_v15 = vld [vmem:[%s4967_s1 + $0x60] sm:$0xff] }
  0xb1   :  { %v2175_v20 = vmax.f32 %v1825_v14, 0.0 }
  0xb2   :  { %v1986_v21 = vmax.f32 %v1353_v19, 0.0  ;;  %3391 = vmatmul.msk.bf16.gmra.mxu0 %vm944_vm1, %v3647_v11  ;;  %3425 = vmatmul.msk.bf16.gmra.mxu1 %vm944_vm1, %v3681_v12 }
  0xb3   :  { %v2461_v22 = vadd.f32 %v2175_v20, %v2174_v13  ;;  %3453 = vmatmul.msk.bf16.gmra.mxu2 %vm944_vm1, %v3709_v17  ;;  %3486 = vmatmul.msk.bf16.gmra.mxu3 %vm944_vm1, %v3742_v18  ;;  %v3683_v17 = vld [vmem:[%s4967_s1 + $0x170] sm:$0xff] }
  0xb4   :  { %v2242_v23 = vadd.f32 %v2241_v8, %v1986_v21 }
  0xb6   :  { %v1662_v24 = vpop.f32.mrf.mxu2  ;;  %v1827_v25 = vpop.f32.mrf.mxu3 }
  0xb7   :  { %v1828_v26 = vadd.f32 %v4023_v44, %v1827_v25  ;;  %v1354_v27 = vpop.f32.mrf.mxu0  ;;  %v4089_v28 = vpop.f32.mrf.mxu1  ;;  %v1663_v32 = vadd.f32 %v4023_v44, %v1662_v24 }
  0xb8   :  { %v1355_v29 = vadd.f32 %v4023_v44, %v1354_v27 }
  0xb9   :  { %v2176_v30 = vmax.f32 %v1828_v26, 0.0  ;;  %v2110_v39 = vmax.f32 %v1663_v32, 0.0 }
  0xba   :  { %v1987_v31 = vmax.f32 %v1355_v29, 0.0 }
  0xbb   :  { %v2462_v33 = vadd.f32 %v2461_v22, %v2176_v30  ;;  %v3711_v22 = vld [vmem:[%s4967_s1 + $0x250] sm:$0xff] }
  0xbc   :  { %v2243_v34 = vadd.f32 %v2242_v23, %v1987_v31  ;;  %v3744_v23 = vld [vmem:[%s4967_s1 + $0x358] sm:$0xff] }
  0xbe   :  { %v1664_v35 = vpop.f32.mrf.mxu2  ;;  %v1829_v36 = vpop.f32.mrf.mxu3 }
  0xbf   :  { %v1665_v40 = vadd.f32 %v4023_v44, %v1664_v35  ;;  %v1830_v42 = vadd.f32 %v4023_v44, %v1829_v36  ;;  %v1357_v43 = vpop.f32.mrf.mxu0  ;;  %v4101_v45 = vpop.f32.mrf.mxu1 }
  0xc0   :  { %v1358_v51 = vadd.f32 %v4023_v44, %v1357_v43 }
  0xc1   :  { %v2111_v52 = vmax.f32 %v1665_v40, 0.0  ;;  %v2177_v53 = vmax.f32 %v1830_v42, 0.0 }
  0xc2   :  { %v1988_v56 = vmax.f32 %v1358_v51, 0.0  ;;  %3392 = vmatmul.msk.bf16.gmra.mxu0 %vm944_vm1, %v3648_v37  ;;  %3426 = vmatmul.msk.bf16.gmra.mxu1 %vm944_vm1, %v3682_v38 }
  0xc3   :  { %v2387_v57 = vadd.f32 %v2111_v52, %v2110_v39  ;;  %v2463_v58 = vadd.f32 %v2462_v33, %v2177_v53  ;;  %3454 = vmatmul.msk.bf16.gmra.mxu2 %vm944_vm1, %v3710_v48  ;;  %3487 = vmatmul.msk.bf16.gmra.mxu3 %vm944_vm1, %v3743_v50  ;;  %v3650_v53 = vld [vmem:[%s4967_s1 + $0x68] sm:$0xff] }
  0xc4   :  { %v2244_v60 = vadd.f32 %v2243_v34, %v1988_v56  ;;  %v3684_v56 = vld [vmem:[%s4967_s1 + $0x178] sm:$0xff] }
  0xc6   :  { %v1667_v61 = vpop.f32.mrf.mxu2  ;;  %v1832_v62 = vpop.f32.mrf.mxu3 }
  0xc7   :  { %v1668_v63 = vadd.f32 %v4023_v44, %v1667_v61  ;;  %v1833_v0 = vadd.f32 %v4023_v44, %v1832_v62  ;;  %v1359_v2 = vpop.f32.mrf.mxu0  ;;  %v4116_v3 = vpop.f32.mrf.mxu1  ;;  %v3712_v62 = vld [vmem:[%s4967_s1 + $0x258] sm:$0xff] }
  0xc8   :  { %v1360_v5 = vadd.f32 %v4023_v44, %v1359_v2 }
  0xc9   :  { %v2112_v6 = vmax.f32 %v1668_v63, 0.0  ;;  %v2178_v7 = vmax.f32 %v1833_v0, 0.0  ;;  %v3745_v63 = vld [vmem:[%s4967_s1 + $0x360] sm:$0xff] }
  0xca   :  { %v1989_v8 = vmax.f32 %v1360_v5, 0.0 }
  0xcb   :  { %v2388_v10 = vadd.f32 %v2387_v57, %v2112_v6  ;;  %v2464_v11 = vadd.f32 %v2463_v58, %v2178_v7 }
  0xcc   :  { %v2245_v12 = vadd.f32 %v2244_v60, %v1989_v8 }
  0xce   :  { %v1669_v13 = vpop.f32.mrf.mxu2  ;;  %v1834_v14 = vpop.f32.mrf.mxu3 }
  0xcf   :  { %v1670_v18 = vadd.f32 %v4023_v44, %v1669_v13  ;;  %v1835_v19 = vadd.f32 %v4023_v44, %v1834_v14  ;;  %v1362_v20 = vpop.f32.mrf.mxu0  ;;  %v4127_v21 = vpop.f32.mrf.mxu1 }
  0xd0   :  { %v1363_v24 = vadd.f32 %v4023_v44, %v1362_v20 }
  0xd1   :  { %v2113_v25 = vmax.f32 %v1670_v18, 0.0  ;;  %v2179_v26 = vmax.f32 %v1835_v19, 0.0 }
  0xd2   :  { %v1990_v27 = vmax.f32 %v1363_v24, 0.0  ;;  %3393 = vmatmul.msk.bf16.gmra.mxu0 %vm944_vm1, %v3649_v15  ;;  %3427 = vmatmul.msk.bf16.gmra.mxu1 %vm944_vm1, %v3683_v17 }
  0xd3   :  { %v2389_v29 = vadd.f32 %v2388_v10, %v2113_v25  ;;  %v2465_v30 = vadd.f32 %v2464_v11, %v2179_v26  ;;  %3455 = vmatmul.msk.bf16.gmra.mxu2 %vm944_vm1, %v3711_v22  ;;  %3488 = vmatmul.msk.bf16.gmra.mxu3 %vm944_vm1, %v3744_v23 }
  0xd4   :  { %v2246_v31 = vadd.f32 %v2245_v12, %v1990_v27 }
  0xd6   :  { %v1672_v32 = vpop.f32.mrf.mxu2  ;;  %v1837_v33 = vpop.f32.mrf.mxu3 }
  0xd7   :  { %v1673_v34 = vadd.f32 %v4023_v44, %v1672_v32  ;;  %v1838_v35 = vadd.f32 %v4023_v44, %v1837_v33  ;;  %v1364_v36 = vpop.f32.mrf.mxu0  ;;  %v4142_v37 = vpop.f32.mrf.mxu1 }
  0xd8   :  { %v1365_v38 = vadd.f32 %v4023_v44, %v1364_v36  ;;  %v3746_v36 = vld [vmem:[%s4967_s1 + $0x368] sm:$0xff] }
  0xd9   :  { %v2114_v39 = vmax.f32 %v1673_v34, 0.0  ;;  %v2180_v40 = vmax.f32 %v1838_v35, 0.0  ;;  %v3713_v35 = vld [vmem:[%s4967_s1 + $0x260] sm:$0xff] }
  0xda   :  { %v1991_v42 = vmax.f32 %v1365_v38, 0.0 }
  0xdb   :  { %v2390_v43 = vadd.f32 %v2389_v29, %v2114_v39  ;;  %v2466_v48 = vadd.f32 %v2465_v30, %v2180_v40  ;;  %v3651_v29 = vld [vmem:[%s4967_s1 + $0x70] sm:$0xff]  ;;  %v3685_v30 = vld [vmem:[%s4967_s1 + $0x180] sm:$0xff] }
  0xdc   :  { %v2247_v50 = vadd.f32 %v2246_v31, %v1991_v42 }
  0xde   :  { %v1674_v51 = vpop.f32.mrf.mxu2  ;;  %v1839_v52 = vpop.f32.mrf.mxu3 }
  0xdf   :  { %v1675_v57 = vadd.f32 %v4023_v44, %v1674_v51  ;;  %v1840_v58 = vadd.f32 %v4023_v44, %v1839_v52  ;;  %v1367_v60 = vpop.f32.mrf.mxu0  ;;  %v4153_v61 = vpop.f32.mrf.mxu1 }
  0xe0   :  { %v1368_v0 = vadd.f32 %v4023_v44, %v1367_v60 }
  0xe1   :  { %v2115_v2 = vmax.f32 %v1675_v57, 0.0  ;;  %v2181_v5 = vmax.f32 %v1840_v58, 0.0 }
  0xe2   :  { %v1992_v6 = vmax.f32 %v1368_v0, 0.0  ;;  %3394 = vmatmul.msk.bf16.gmra.mxu0 %vm944_vm1, %v3650_v53  ;;  %3428 = vmatmul.msk.bf16.gmra.mxu1 %vm944_vm1, %v3684_v56 }
  0xe3   :  { %v2391_v7 = vadd.f32 %v2390_v43, %v2115_v2  ;;  %v2467_v8 = vadd.f32 %v2466_v48, %v2181_v5  ;;  %3456 = vmatmul.msk.bf16.gmra.mxu2 %vm944_vm1, %v3712_v62  ;;  %3489 = vmatmul.msk.bf16.gmra.mxu3 %vm944_vm1, %v3745_v63 }
  0xe4   :  { %v2248_v10 = vadd.f32 %v2247_v50, %v1992_v6 }
  0xe6   :  { %v1677_v11 = vpop.f32.mrf.mxu2  ;;  %v1842_v12 = vpop.f32.mrf.mxu3 }
  0xe7   :  { %v1678_v13 = vadd.f32 %v4023_v44, %v1677_v11  ;;  %v1843_v14 = vadd.f32 %v4023_v44, %v1842_v12  ;;  %v1369_v15 = vpop.f32.mrf.mxu0  ;;  %v4168_v17 = vpop.f32.mrf.mxu1  ;;  %v3686_v11 = vld [vmem:[%s4967_s1 + $0x188] sm:$0xff] }
  0xe8   :  { %v1370_v18 = vadd.f32 %v4023_v44, %v1369_v15 }
  0xe9   :  { %v2116_v19 = vmax.f32 %v1678_v13, 0.0  ;;  %v2182_v20 = vmax.f32 %v1843_v14, 0.0 }
  0xea   :  { %v1993_v22 = vmax.f32 %v1370_v18, 0.0  ;;  %v3714_v18 = vld [vmem:[%s4967_s1 + $0x268] sm:$0xff] }
  0xeb   :  { %v2392_v23 = vadd.f32 %v2391_v7, %v2116_v19  ;;  %v2468_v24 = vadd.f32 %v2467_v8, %v2182_v20  ;;  %v3747_v19 = vld [vmem:[%s4967_s1 + $0x370] sm:$0xff] }
  0xec   :  { %v2249_v25 = vadd.f32 %v2248_v10, %v1993_v22  ;;  %v3652_v10 = vld [vmem:[%s4967_s1 + $0x78] sm:$0xff] }
  0xee   :  { %v1679_v26 = vpop.f32.mrf.mxu2  ;;  %v1844_v27 = vpop.f32.mrf.mxu3 }
  0xef   :  { %v1680_v31 = vadd.f32 %v4023_v44, %v1679_v26  ;;  %v1845_v32 = vadd.f32 %v4023_v44, %v1844_v27  ;;  %v1372_v33 = vpop.f32.mrf.mxu0  ;;  %v4179_v34 = vpop.f32.mrf.mxu1 }
  0xf0   :  { %v1373_v38 = vadd.f32 %v4023_v44, %v1372_v33 }
  0xf1   :  { %v2117_v39 = vmax.f32 %v1680_v31, 0.0  ;;  %v2183_v40 = vmax.f32 %v1845_v32, 0.0 }
  0xf2   :  { %v1994_v42 = vmax.f32 %v1373_v38, 0.0  ;;  %3395 = vmatmul.msk.bf16.gmra.mxu0 %vm944_vm1, %v3651_v29  ;;  %3429 = vmatmul.msk.bf16.gmra.mxu1 %vm944_vm1, %v3685_v30 }
  0xf3   :  { %v2393_v43 = vadd.f32 %v2392_v23, %v2117_v39  ;;  %v2469_v48 = vadd.f32 %v2468_v24, %v2183_v40  ;;  %3457 = vmatmul.msk.bf16.gmra.mxu2 %vm944_vm1, %v3713_v35  ;;  %3490 = vmatmul.msk.bf16.gmra.mxu3 %vm944_vm1, %v3746_v36 }
  0xf4   :  { %v2250_v50 = vadd.f32 %v2249_v25, %v1994_v42 }
  0xf6   :  { %v1682_v51 = vpop.f32.mrf.mxu2  ;;  %v1847_v52 = vpop.f32.mrf.mxu3 }
  0xf7   :  { %v1683_v53 = vadd.f32 %v4023_v44, %v1682_v51  ;;  %v1848_v56 = vadd.f32 %v4023_v44, %v1847_v52  ;;  %v1374_v57 = vpop.f32.mrf.mxu0  ;;  %v4194_v58 = vpop.f32.mrf.mxu1  ;;  %v3653_v52 = vld [vmem:[%s4967_s1 + $0x80] sm:$0xff] }
  0xf8   :  { %v1375_v60 = vadd.f32 %v4023_v44, %v1374_v57 }
  0xf9   :  { %v2118_v62 = vmax.f32 %v1683_v53, 0.0  ;;  %v2184_v63 = vmax.f32 %v1848_v56, 0.0  ;;  %v3687_v53 = vld [vmem:[%s4967_s1 + $0x190] sm:$0xff] }
  0xfa   :  { %v1995_v0 = vmax.f32 %v1375_v60, 0.0 }
  0xfb   :  { %v2394_v2 = vadd.f32 %v2393_v43, %v2118_v62  ;;  %v2470_v5 = vadd.f32 %v2469_v48, %v2184_v63  ;;  %v3715_v63 = vld [vmem:[%s4967_s1 + $0x270] sm:$0xff] }
  0xfc   :  { %v2251_v6 = vadd.f32 %v2250_v50, %v1995_v0  ;;  %v3748_v0 = vld [vmem:[%s4967_s1 + $0x378] sm:$0xff] }
  0xfe   :  { %v1684_v7 = vpop.f32.mrf.mxu2  ;;  %v1849_v8 = vpop.f32.mrf.mxu3 }
  0xff   :  { %v1685_v12 = vadd.f32 %v4023_v44, %v1684_v7  ;;  %v1850_v13 = vadd.f32 %v4023_v44, %v1849_v8  ;;  %v1377_v14 = vpop.f32.mrf.mxu0  ;;  %v4205_v15 = vpop.f32.mrf.mxu1 }
 0x100   :  { %v1378_v20 = vadd.f32 %v4023_v44, %v1377_v14 }
 0x101   :  { %v2119_v22 = vmax.f32 %v1685_v12, 0.0  ;;  %v2185_v23 = vmax.f32 %v1850_v13, 0.0 }
 0x102   :  { %v1996_v24 = vmax.f32 %v1378_v20, 0.0  ;;  %3396 = vmatmul.msk.bf16.gmra.mxu0 %vm944_vm1, %v3652_v10  ;;  %3430 = vmatmul.msk.bf16.gmra.mxu1 %vm944_vm1, %v3686_v11 }
 0x103   :  { %v2395_v25 = vadd.f32 %v2394_v2, %v2119_v22  ;;  %v2471_v26 = vadd.f32 %v2470_v5, %v2185_v23  ;;  %3458 = vmatmul.msk.bf16.gmra.mxu2 %vm944_vm1, %v3714_v18  ;;  %3491 = vmatmul.msk.bf16.gmra.mxu3 %vm944_vm1, %v3747_v19 }
 0x104   :  { %v2252_v27 = vadd.f32 %v2251_v6, %v1996_v24 }
 0x106   :  { %v1687_v29 = vpop.f32.mrf.mxu2  ;;  %v1852_v30 = vpop.f32.mrf.mxu3 }
 0x107   :  { %v1688_v31 = vadd.f32 %v4023_v44, %v1687_v29  ;;  %v1853_v32 = vadd.f32 %v4023_v44, %v1852_v30  ;;  %v1379_v33 = vpop.f32.mrf.mxu0  ;;  %v4220_v35 = vpop.f32.mrf.mxu1  ;;  %v3774_v30 = vld [vmem:[%s4970_s4 + $0x38] sm:$0xff] }
 0x108   :  { %v1380_v36 = vadd.f32 %v4023_v44, %v1379_v33  ;;  %v3654_v33 = vld [vmem:[%s4967_s1 + $0x88] sm:$0xff]  ;;  %2629 = vmatpush.bf16.msrb.mxu1 %v3774_v30  ;;  %v3717_v30 = vld [vmem:[%s4967_s1 + $0x280] sm:$0xff] }
 0x109   :  { %v2120_v38 = vmax.f32 %v1688_v31, 0.0  ;;  %v2186_v39 = vmax.f32 %v1853_v32, 0.0 }
 0x10a   :  { %v1997_v40 = vmax.f32 %v1380_v36, 0.0  ;;  %v3688_v36 = vld [vmem:[%s4967_s1 + $0x198] sm:$0xff] }
 0x10b   :  { %v2396_v42 = vadd.f32 %v2395_v25, %v2120_v38  ;;  %v2472_v43 = vadd.f32 %v2471_v26, %v2186_v39 }
 0x10c   :  { %v2253_v48 = vadd.f32 %v2252_v27, %v1997_v40 }
 0x10e   :  { %v1689_v50 = vpop.f32.mrf.mxu2  ;;  %v1854_v51 = vpop.f32.mrf.mxu3 }
 0x10f   :  { %v1690_v56 = vadd.f32 %v4023_v44, %v1689_v50  ;;  %v1855_v57 = vadd.f32 %v4023_v44, %v1854_v51  ;;  %v1382_v60 = vpop.f32.mrf.mxu0  ;;  %v4231_v62 = vpop.f32.mrf.mxu1 }
 0x110   :  { %v1383_v2 = vadd.f32 %v4023_v44, %v1382_v60 }
 0x111   :  { %v2121_v5 = vmax.f32 %v1690_v56, 0.0  ;;  %v2187_v6 = vmax.f32 %v1855_v57, 0.0 }
 0x112   :  { %v1998_v7 = vmax.f32 %v1383_v2, 0.0  ;;  %3397 = vmatmul.msk.bf16.gmra.mxu0 %vm944_vm1, %v3653_v52  ;;  %3431 = vmatmul.msk.bf16.gmra.mxu1 %vm944_vm1, %v3687_v53 }
 0x113   :  { %v2397_v8 = vadd.f32 %v2396_v42, %v2121_v5  ;;  %v2473_v10 = vadd.f32 %v2472_v43, %v2187_v6  ;;  %3459 = vmatmul.msk.bf16.gmra.mxu2 %vm944_vm1, %v3715_v63  ;;  %3492 = vmatmul.msk.bf16.gmra.mxu3 %vm944_vm1, %v3748_v0  ;;  %v3716_v43 = vld [vmem:[%s4967_s1 + $0x278] sm:$0xff] }
 0x114   :  { %v2254_v11 = vadd.f32 %v2253_v48, %v1998_v7  ;;  %v3749_v48 = vld [vmem:[%s4967_s1 + $0x380] sm:$0xff] }
 0x116   :  { %v1692_v12 = vpop.f32.mrf.mxu2  ;;  %v1857_v13 = vpop.f32.mrf.mxu3 }
 0x117   :  { %v1693_v14 = vadd.f32 %v4023_v44, %v1692_v12  ;;  %v1858_v18 = vadd.f32 %v4023_v44, %v1857_v13  ;;  %v1384_v19 = vpop.f32.mrf.mxu0  ;;  %v4246_v20 = vpop.f32.mrf.mxu1 }
 0x118   :  { %v1385_v22 = vadd.f32 %v4023_v44, %v1384_v19 }
 0x119   :  { %v2122_v23 = vmax.f32 %v1693_v14, 0.0  ;;  %v2188_v24 = vmax.f32 %v1858_v18, 0.0 }
 0x11a   :  { %v1999_v25 = vmax.f32 %v1385_v22, 0.0 }
 0x11b   :  { %v2398_v26 = vadd.f32 %v2397_v8, %v2122_v23  ;;  %v2474_v27 = vadd.f32 %v2473_v10, %v2188_v24  ;;  %v3655_v23 = vld [vmem:[%s4967_s1 + $0x90] sm:$0xff]  ;;  %v3689_v24 = vld [vmem:[%s4967_s1 + $0x1a0] sm:$0xff] }
 0x11c   :  { %v2255_v29 = vadd.f32 %v2254_v11, %v1999_v25 }
 0x11e   :  { %v1694_v31 = vpop.f32.mrf.mxu2  ;;  %v1859_v32 = vpop.f32.mrf.mxu3 }
 0x11f   :  { %v1695_v38 = vadd.f32 %v4023_v44, %v1694_v31  ;;  %v1860_v39 = vadd.f32 %v4023_v44, %v1859_v32  ;;  %v1387_v40 = vpop.f32.mrf.mxu0  ;;  %v4260_v42 = vpop.f32.mrf.mxu1  ;;  %v3750_v31 = vld [vmem:[%s4967_s1 + $0x388] sm:$0xff] }
 0x120   :  { %v1388_v50 = vadd.f32 %v4023_v44, %v1387_v40 }
 0x121   :  { %v2123_v51 = vmax.f32 %v1695_v38, 0.0  ;;  %v2189_v52 = vmax.f32 %v1860_v39, 0.0 }
 0x122   :  { %v2000_v53 = vmax.f32 %v1388_v50, 0.0  ;;  %3398 = vmatmul.msk.bf16.gmra.mxu0 %vm944_vm1, %v3654_v33  ;;  %3432 = vmatmul.msk.bf16.gmra.mxu1 %vm944_vm1, %v3688_v36 }
 0x123   :  { %v2399_v56 = vadd.f32 %v2398_v26, %v2123_v51  ;;  %v2475_v57 = vadd.f32 %v2474_v27, %v2189_v52  ;;  %3460 = vmatmul.msk.bf16.gmra.mxu2 %vm944_vm1, %v3716_v43  ;;  %3493 = vmatmul.msk.bf16.gmra.mxu3 %vm944_vm1, %v3749_v48 }
 0x124   :  { %v2256_v60 = vadd.f32 %v2255_v29, %v2000_v53 }
 0x126   :  { %v1697_v63 = vpop.f32.mrf.mxu2  ;;  %v1862_v0 = vpop.f32.mrf.mxu3 }
 0x127   :  { %v1698_v2 = vadd.f32 %v4023_v44, %v1697_v63  ;;  %v1863_v5 = vadd.f32 %v4023_v44, %v1862_v0  ;;  %v1389_v6 = vpop.f32.mrf.mxu0  ;;  %v4275_v7 = vpop.f32.mrf.mxu1 }
 0x128   :  { %v1390_v8 = vadd.f32 %v4023_v44, %v1389_v6 }
 0x129   :  { %v2124_v10 = vmax.f32 %v1698_v2, 0.0  ;;  %v2190_v11 = vmax.f32 %v1863_v5, 0.0 }
 0x12a   :  { %v2001_v12 = vmax.f32 %v1390_v8, 0.0 }
 0x12b   :  { %v2400_v13 = vadd.f32 %v2399_v56, %v2124_v10  ;;  %v2476_v14 = vadd.f32 %v2475_v57, %v2190_v11  ;;  %v3656_v11 = vld [vmem:[%s4967_s1 + $0x98] sm:$0xff] }
 0x12c   :  { %v2257_v18 = vadd.f32 %v2256_v60, %v2001_v12  ;;  %v3690_v12 = vld [vmem:[%s4967_s1 + $0x1a8] sm:$0xff] }
 0x12e   :  { %v1699_v19 = vpop.f32.mrf.mxu2  ;;  %v1864_v22 = vpop.f32.mrf.mxu3 }
 0x12f   :  { %v1700_v25 = vadd.f32 %v4023_v44, %v1699_v19  ;;  %v1865_v26 = vadd.f32 %v4023_v44, %v1864_v22  ;;  %v1392_v27 = vpop.f32.mrf.mxu0  ;;  %v4286_v29 = vpop.f32.mrf.mxu1  ;;  %v3718_v22 = vld [vmem:[%s4967_s1 + $0x288] sm:$0xff] }
 0x130   :  { %v1393_v32 = vadd.f32 %v4023_v44, %v1392_v27 }
 0x131   :  { %v2125_v33 = vmax.f32 %v1700_v25, 0.0  ;;  %v2191_v36 = vmax.f32 %v1865_v26, 0.0 }
 0x132   :  { %v2002_v38 = vmax.f32 %v1393_v32, 0.0  ;;  %3399 = vmatmul.msk.bf16.gmra.mxu0 %vm944_vm1, %v3655_v23  ;;  %3433 = vmatmul.msk.bf16.gmra.mxu1 %vm944_vm1, %v3689_v24  ;;  %v3751_v23 = vld [vmem:[%s4967_s1 + $0x390] sm:$0xff] }
 0x133   :  { %v2401_v39 = vadd.f32 %v2400_v13, %v2125_v33  ;;  %v2477_v40 = vadd.f32 %v2476_v14, %v2191_v36  ;;  %3461 = vmatmul.msk.bf16.gmra.mxu2 %vm944_vm1, %v3717_v30  ;;  %3494 = vmatmul.msk.bf16.gmra.mxu3 %vm944_vm1, %v3750_v31 }
 0x134   :  { %v2258_v43 = vadd.f32 %v2257_v18, %v2002_v38 }
 0x136   :  { %v1702_v48 = vpop.f32.mrf.mxu2  ;;  %v1867_v50 = vpop.f32.mrf.mxu3 }
 0x137   :  { %v1703_v51 = vadd.f32 %v4023_v44, %v1702_v48  ;;  %v1868_v52 = vadd.f32 %v4023_v44, %v1867_v50  ;;  %v1394_v53 = vpop.f32.mrf.mxu0  ;;  %v4301_v56 = vpop.f32.mrf.mxu1 }
 0x138   :  { %v1395_v57 = vadd.f32 %v4023_v44, %v1394_v53 }
 0x139   :  { %v2126_v60 = vmax.f32 %v1703_v51, 0.0  ;;  %v2192_v63 = vmax.f32 %v1868_v52, 0.0 }
 0x13a   :  { %v2003_v0 = vmax.f32 %v1395_v57, 0.0 }
 0x13b   :  { %v2402_v2 = vadd.f32 %v2401_v39, %v2126_v60  ;;  %v2478_v5 = vadd.f32 %v2477_v40, %v2192_v63 }
 0x13c   :  { %v2259_v6 = vadd.f32 %v2258_v43, %v2003_v0 }
 0x13e   :  { %v1704_v8 = vpop.f32.mrf.mxu2  ;;  %v1869_v10 = vpop.f32.mrf.mxu3 }
 0x13f   :  { %v1705_v13 = vadd.f32 %v4023_v44, %v1704_v8  ;;  %v1870_v14 = vadd.f32 %v4023_v44, %v1869_v10  ;;  %v1397_v18 = vpop.f32.mrf.mxu0  ;;  %v4312_v19 = vpop.f32.mrf.mxu1 }
 0x140   :  { %v1398_v24 = vadd.f32 %v4023_v44, %v1397_v18 }
 0x141   :  { %v2127_v25 = vmax.f32 %v1705_v13, 0.0  ;;  %v2193_v26 = vmax.f32 %v1870_v14, 0.0  ;;  %v3752_v13 = vld [vmem:[%s4967_s1 + $0x398] sm:$0xff] }
 0x142   :  { %v2004_v27 = vmax.f32 %v1398_v24, 0.0  ;;  %3400 = vmatmul.msk.bf16.gmra.mxu0 %vm944_vm1, %v3656_v11  ;;  %3434 = vmatmul.msk.bf16.gmra.mxu1 %vm944_vm1, %v3690_v12  ;;  %v3719_v12 = vld [vmem:[%s4967_s1 + $0x290] sm:$0xff] }
 0x143   :  { %v2403_v30 = vadd.f32 %v2402_v2, %v2127_v25  ;;  %v2479_v31 = vadd.f32 %v2478_v5, %v2193_v26  ;;  %3462 = vmatmul.msk.bf16.gmra.mxu2 %vm944_vm1, %v3718_v22  ;;  %3495 = vmatmul.msk.bf16.gmra.mxu3 %vm944_vm1, %v3751_v23  ;;  %v3657_v2 = vld [vmem:[%s4967_s1 + $0xa0] sm:$0xff]  ;;  %v3691_v5 = vld [vmem:[%s4967_s1 + $0x1b0] sm:$0xff] }
 0x144   :  { %v2260_v32 = vadd.f32 %v2259_v6, %v2004_v27  ;;  %v3782_v27 = vld [vmem:[%s4970_s4 + $0x78] sm:$0xff] }
 0x145   :  { %2726 = vmatpush.bf16.msrb.mxu2 %v3782_v27 }
 0x146   :  { %v1707_v33 = vpop.f32.mrf.mxu2  ;;  %v1872_v36 = vpop.f32.mrf.mxu3 }
 0x147   :  { %v1708_v38 = vadd.f32 %v4023_v44, %v1707_v33  ;;  %v1873_v39 = vadd.f32 %v4023_v44, %v1872_v36  ;;  %v1399_v40 = vpop.f32.mrf.mxu0  ;;  %v4327_v43 = vpop.f32.mrf.mxu1 }
 0x148   :  { %v1400_v48 = vadd.f32 %v4023_v44, %v1399_v40 }
 0x149   :  { %v2128_v50 = vmax.f32 %v1708_v38, 0.0  ;;  %v2194_v51 = vmax.f32 %v1873_v39, 0.0 }
 0x14a   :  { %v2005_v52 = vmax.f32 %v1400_v48, 0.0 }
 0x14b   :  { %v2404_v53 = vadd.f32 %v2403_v30, %v2128_v50  ;;  %v2480_v57 = vadd.f32 %v2479_v31, %v2194_v51  ;;  %v2659_v30 = vld [vmem:[%s4969_s3 + $0x78] sm:$0xff]  ;;  %v3773_v31 = vld [vmem:[%s4970_s4 + $0x30] sm:$0xff] }
 0x14c   :  { %v2261_v60 = vadd.f32 %v2260_v32, %v2005_v52  ;;  %2739 = vmatpush.msrb.mxu3 %v2659_v30  ;;  %2630 = vmatpush.bf16.msrb.mxu1 %v3773_v31 }
 0x14e   :  { %v1709_v63 = vpop.f32.mrf.mxu2  ;;  %v1874_v0 = vpop.f32.mrf.mxu3 }
 0x14f   :  { %v1710_v6 = vadd.f32 %v4023_v44, %v1709_v63  ;;  %v1875_v8 = vadd.f32 %v4023_v44, %v1874_v0  ;;  %v1402_v10 = vpop.f32.mrf.mxu0  ;;  %v4338_v11 = vpop.f32.mrf.mxu1 }
 0x150   :  { %v1403_v14 = vadd.f32 %v4023_v44, %v1402_v10 }
 0x151   :  { %v2129_v18 = vmax.f32 %v1710_v6, 0.0  ;;  %v2195_v22 = vmax.f32 %v1875_v8, 0.0 }
 0x152   :  { %v2006_v23 = vmax.f32 %v1403_v14, 0.0  ;;  %3401 = vmatmul.msk.bf16.gmra.mxu0 %vm944_vm1, %v3657_v2  ;;  %3435 = vmatmul.msk.bf16.gmra.mxu1 %vm944_vm1, %v3691_v5  ;;  %v3658_v2 = vld [vmem:[%s4967_s1 + $0xa8] sm:$0xff]  ;;  %v3692_v5 = vld [vmem:[%s4967_s1 + $0x1b8] sm:$0xff]  ;;  %v3753_v14 = vld [vmem:[%s4967_s1 + $0x3a0] sm:$0xff] }
 0x153   :  { %v2405_v24 = vadd.f32 %v2404_v53, %v2129_v18  ;;  %v2481_v25 = vadd.f32 %v2480_v57, %v2195_v22  ;;  %3463 = vmatmul.msk.bf16.gmra.mxu2 %vm944_vm1, %v3719_v12  ;;  %3496 = vmatmul.msk.bf16.gmra.mxu3 %vm944_vm1, %v3752_v13  ;;  %v3720_v13 = vld [vmem:[%s4967_s1 + $0x298] sm:$0xff] }
 0x154   :  { %v2262_v26 = vadd.f32 %v2261_v60, %v2006_v23 }
 0x156   :  { %v1712_v32 = vpop.f32.mrf.mxu2  ;;  %v1877_v33 = vpop.f32.mrf.mxu3 }
 0x157   :  { %v1713_v36 = vadd.f32 %v4023_v44, %v1712_v32  ;;  %v1878_v38 = vadd.f32 %v4023_v44, %v1877_v33  ;;  %v1404_v39 = vpop.f32.mrf.mxu0  ;;  %v4362_v40 = vpop.f32.mrf.mxu1 }
 0x158   :  { %4976 = vst [vmem:[#allocation6_spill] sm:$0xff] %v4362_v40  ;;  %v1405_v48 = vadd.f32 %v4023_v44, %v1404_v39 }
 0x159   :  { %v2130_v50 = vmax.f32 %v1713_v36, 0.0  ;;  %v2196_v51 = vmax.f32 %v1878_v38, 0.0 }
 0x15a   :  { %v2007_v52 = vmax.f32 %v1405_v48, 0.0 }
 0x15b   :  { %v2406_v53 = vadd.f32 %v2405_v24, %v2130_v50  ;;  %v2482_v57 = vadd.f32 %v2481_v25, %v2196_v51 }
 0x15c   :  { %v2263_v60 = vadd.f32 %v2262_v26, %v2007_v52 }
 0x15e   :  { %v1714_v63 = vpop.f32.mrf.mxu2  ;;  %v1879_v0 = vpop.f32.mrf.mxu3 }
 0x15f   :  { %v1715_v6 = vadd.f32 %v4023_v44, %v1714_v63  ;;  %v1880_v8 = vadd.f32 %v4023_v44, %v1879_v0  ;;  %v1407_v10 = vpop.f32.mrf.mxu0  ;;  %v4373_v12 = vpop.f32.mrf.mxu1 }
 0x160   :  { %4977 = vst [vmem:[#allocation7_spill] sm:$0xff] %v4373_v12  ;;  %v1408_v18 = vadd.f32 %v4023_v44, %v1407_v10 }
 0x161   :  { %v2131_v22 = vmax.f32 %v1715_v6, 0.0  ;;  %v2197_v23 = vmax.f32 %v1880_v8, 0.0 }
 0x162   :  { %v2008_v24 = vmax.f32 %v1408_v18, 0.0  ;;  %3402 = vmatmul.msk.bf16.gmra.mxu0 %vm944_vm1, %v3658_v2  ;;  %3436 = vmatmul.msk.bf16.gmra.mxu1 %vm944_vm1, %v3692_v5  ;;  %v3693_v2 = vld [vmem:[%s4967_s1 + $0x1c0] sm:$0xff] }
 0x163   :  { %v2407_v25 = vadd.f32 %v2406_v53, %v2131_v22  ;;  %v2483_v26 = vadd.f32 %v2482_v57, %v2197_v23  ;;  %3464 = vmatmul.msk.bf16.gmra.mxu2 %vm944_vm1, %v3720_v13  ;;  %3497 = vmatmul.msk.bf16.gmra.mxu3 %vm944_vm1, %v3753_v14  ;;  %v3721_v13 = vld [vmem:[%s4967_s1 + $0x2a0] sm:$0xff]  ;;  %v3754_v14 = vld [vmem:[%s4967_s1 + $0x3a8] sm:$0xff] }
 0x164   :  { %v2264_v27 = vadd.f32 %v2263_v60, %v2008_v24  ;;  %v3659_v60 = vld [vmem:[%s4967_s1 + $0xb0] sm:$0xff] }
 0x166   :  { %v1717_v30 = vpop.f32.mrf.mxu2  ;;  %v1882_v31 = vpop.f32.mrf.mxu3 }
 0x167   :  { %v1718_v32 = vadd.f32 %v4023_v44, %v1717_v30  ;;  %v1883_v33 = vadd.f32 %v4023_v44, %v1882_v31  ;;  %v1409_v36 = vpop.f32.mrf.mxu0  ;;  %v4388_v38 = vpop.f32.mrf.mxu1 }
 0x168   :  { %4978 = vst [vmem:[#allocation8_spill] sm:$0xff] %v4388_v38  ;;  %v1410_v39 = vadd.f32 %v4023_v44, %v1409_v36 }
 0x169   :  { %v2132_v48 = vmax.f32 %v1718_v32, 0.0  ;;  %v2198_v50 = vmax.f32 %v1883_v33, 0.0 }
 0x16a   :  { %v2009_v51 = vmax.f32 %v1410_v39, 0.0 }
 0x16b   :  { %v2408_v52 = vadd.f32 %v2407_v25, %v2132_v48  ;;  %v2484_v53 = vadd.f32 %v2483_v26, %v2198_v50 }
 0x16c   :  { %v2265_v57 = vadd.f32 %v2264_v27, %v2009_v51 }
 0x16e   :  { %v1719_v63 = vpop.f32.mrf.mxu2  ;;  %v1884_v0 = vpop.f32.mrf.mxu3 }
 0x16f   :  { %v1720_v5 = vadd.f32 %v4023_v44, %v1719_v63  ;;  %v1885_v6 = vadd.f32 %v4023_v44, %v1884_v0  ;;  %v1412_v8 = vpop.f32.mrf.mxu0  ;;  %v1582_v10 = vpop.f32.mrf.mxu1 }
 0x170   :  { %v1413_v18 = vadd.f32 %v4023_v44, %v1412_v8  ;;  %v1583_v30 = vadd.f32 %v4023_v44, %v1582_v10 }
 0x171   :  { %v2133_v22 = vmax.f32 %v1720_v5, 0.0  ;;  %v2199_v23 = vmax.f32 %v1885_v6, 0.0 }
 0x172   :  { %v2010_v24 = vmax.f32 %v1413_v18, 0.0  ;;  %3403 = vmatmul.msk.bf16.gmra.mxu0 %vm944_vm1, %v3659_v60  ;;  %3437 = vmatmul.msk.bf16.gmra.mxu1 %vm944_vm1, %v3693_v2  ;;  %v2078_v50 = vmax.f32 %v1583_v30, 0.0  ;;  %v3694_v18 = vld [vmem:[%s4967_s1 + $0x1c8] sm:$0xff] }
 0x173   :  { %v2409_v25 = vadd.f32 %v2408_v52, %v2133_v22  ;;  %v2485_v26 = vadd.f32 %v2484_v53, %v2199_v23  ;;  %3465 = vmatmul.msk.bf16.gmra.mxu2 %vm944_vm1, %v3721_v13  ;;  %3498 = vmatmul.msk.bf16.gmra.mxu3 %vm944_vm1, %v3754_v14  ;;  %v2658_v53 = vld [vmem:[%s4969_s3 + $0x70] sm:$0xff]  ;;  %v3660_v14 = vld [vmem:[%s4967_s1 + $0xb8] sm:$0xff] }
 0x174   :  { %v2266_v27 = vadd.f32 %v2265_v57, %v2010_v24  ;;  %2740 = vmatpush.msrb.mxu3 %v2658_v53 }
 0x176   :  { %v1722_v31 = vpop.f32.mrf.mxu2  ;;  %v1887_v32 = vpop.f32.mrf.mxu3 }
 0x177   :  { %v1723_v33 = vadd.f32 %v4023_v44, %v1722_v31  ;;  %v1888_v36 = vadd.f32 %v4023_v44, %v1887_v32  ;;  %v1414_v39 = vpop.f32.mrf.mxu0  ;;  %v1584_v48 = vpop.f32.mrf.mxu1 }
 0x178   :  { %v1415_v51 = vadd.f32 %v4023_v44, %v1414_v39  ;;  %v1585_v52 = vadd.f32 %v4023_v44, %v1584_v48 }
 0x179   :  { %v2134_v57 = vmax.f32 %v1723_v33, 0.0  ;;  %v2200_v63 = vmax.f32 %v1888_v36, 0.0 }
 0x17a   :  { %v2011_v0 = vmax.f32 %v1415_v51, 0.0  ;;  %v2079_v60 = vmax.f32 %v1585_v52, 0.0 }
 0x17b   :  { %v2410_v2 = vadd.f32 %v2409_v25, %v2134_v57  ;;  %v2486_v5 = vadd.f32 %v2485_v26, %v2200_v63  ;;  %v3722_v25 = vld [vmem:[%s4967_s1 + $0x2a8] sm:$0xff]  ;;  %v3755_v26 = vld [vmem:[%s4967_s1 + $0x3b0] sm:$0xff] }
 0x17c   :  { %v2267_v6 = vadd.f32 %v2266_v27, %v2011_v0  ;;  %v2350_v8 = vadd.f32 %v2079_v60, %v2078_v50 }
 0x17e   :  { %v1724_v10 = vpop.f32.mrf.mxu2  ;;  %v1889_v13 = vpop.f32.mrf.mxu3 }
 0x17f   :  { %v1725_v22 = vadd.f32 %v4023_v44, %v1724_v10  ;;  %v1890_v23 = vadd.f32 %v4023_v44, %v1889_v13  ;;  %v1417_v24 = vpop.f32.mrf.mxu0  ;;  %v1587_v30 = vpop.f32.mrf.mxu1 }
 0x180   :  { %v1418_v27 = vadd.f32 %v4023_v44, %v1417_v24  ;;  %v1588_v31 = vadd.f32 %v4023_v44, %v1587_v30  ;;  %v4441_v44 = vld [vmem:[%s4971_s5] ss:$0 sm:$0xff] }
 0x181   :  { %v2135_v32 = vmax.f32 %v1725_v22, 0.0  ;;  %v2201_v33 = vmax.f32 %v1890_v23, 0.0 }
 0x182   :  { %v2012_v36 = vmax.f32 %v1418_v27, 0.0  ;;  %v2080_v39 = vmax.f32 %v1588_v31, 0.0  ;;  %3404 = vmatmul.msk.bf16.gmra.mxu0 %vm944_vm1, %v3660_v14  ;;  %3438 = vmatmul.msk.bf16.gmra.mxu1 %vm944_vm1, %v3694_v18  ;;  %v3695_v27 = vld [vmem:[%s4967_s1 + $0x1d0] sm:$0xff] }
 0x183   :  { %v2411_v48 = vadd.f32 %v2410_v2, %v2135_v32  ;;  %v2487_v50 = vadd.f32 %v2486_v5, %v2201_v33  ;;  %3466 = vmatmul.msk.bf16.gmra.mxu2 %vm944_vm1, %v3722_v25  ;;  %3499 = vmatmul.msk.bf16.gmra.mxu3 %vm944_vm1, %v3755_v26  ;;  %v3661_v26 = vld [vmem:[%s4967_s1 + $0xc0] sm:$0xff] }
 0x184   :  { %v2268_v51 = vadd.f32 %v2267_v6, %v2012_v36  ;;  %v2351_v52 = vadd.f32 %v2350_v8, %v2080_v39  ;;  %v3723_v39 = vld [vmem:[%s4967_s1 + $0x2b0] sm:$0xff] }
 0x186   :  { %v1727_v53 = vpop.f32.mrf.mxu2  ;;  %v1892_v57 = vpop.f32.mrf.mxu3 }
 0x187   :  { %v1728_v63 = vadd.f32 %v4441_v44, %v1727_v53  ;;  %v1893_v0 = vadd.f32 %v4441_v44, %v1892_v57  ;;  %v1419_v60 = vpop.f32.mrf.mxu0  ;;  %v1589_v2 = vpop.f32.mrf.mxu1 }
 0x188   :  { %v1420_v5 = vadd.f32 %v4441_v44, %v1419_v60  ;;  %v1590_v10 = vadd.f32 %v4441_v44, %v1589_v2 }
 0x189   :  { %v2136_v13 = vmax.f32 %v1728_v63, 0.0  ;;  %v2202_v6 = vmax.f32 %v1893_v0, 0.0 }
 0x18a   :  { %v2013_v8 = vmax.f32 %v1420_v5, 0.0  ;;  %v2081_v14 = vmax.f32 %v1590_v10, 0.0 }
 0x18b   :  { %v2412_v18 = vadd.f32 %v2411_v48, %v2136_v13  ;;  %v2488_v22 = vadd.f32 %v2487_v50, %v2202_v6  ;;  %v3756_v48 = vld [vmem:[%s4967_s1 + $0x3b8] sm:$0xff]  ;;  %v3772_v50 = vld [vmem:[%s4970_s4 + $0x28] sm:$0xff] }
 0x18c   :  { %v4447_v23 = vadd.f32 %v2268_v51, %v2013_v8  ;;  %v2352_v24 = vadd.f32 %v2351_v52, %v2081_v14  ;;  %2631 = vmatpush.bf16.msrb.mxu1 %v3772_v50  ;;  %v3696_v50 = vld [vmem:[%s4967_s1 + $0x1d8] sm:$0xff] }
 0x18e   :  { %v1729_v30 = vpop.f32.mrf.mxu2  ;;  %v1894_v25 = vpop.f32.mrf.mxu3 }
 0x18f   :  { %v1730_v31 = vadd.f32 %v4441_v44, %v1729_v30  ;;  %v1895_v32 = vadd.f32 %v4441_v44, %v1894_v25  ;;  %v1422_v33 = vpop.f32.mrf.mxu0  ;;  %v1592_v36 = vpop.f32.mrf.mxu1 }
 0x190   :  { %v1593_v51 = vadd.f32 %v4441_v44, %v1592_v36  ;;  %v1423_v2 = vadd.f32 %v4441_v44, %v1422_v33 }
 0x191   :  { %v2137_v52 = vmax.f32 %v1730_v31, 0.0  ;;  %v2203_v53 = vmax.f32 %v1895_v32, 0.0 }
 0x192   :  { %v2082_v57 = vmax.f32 %v1593_v51, 0.0  ;;  %3405 = vmatmul.msk.bf16.gmra.mxu0 %vm944_vm1, %v3661_v26  ;;  %3439 = vmatmul.msk.bf16.gmra.mxu1 %vm944_vm1, %v3695_v27  ;;  %v2014_v26 = vmax.f32 %v1423_v2, 0.0  ;;  %v3724_v51 = vld [vmem:[%s4967_s1 + $0x2b8] sm:$0xff]  ;;  %v3781_v2 = vld [vmem:[%s4970_s4 + $0x70] sm:$0xff] }
 0x193   :  { %v2413_v63 = vadd.f32 %v2412_v18, %v2137_v52  ;;  %v2489_v0 = vadd.f32 %v2488_v22, %v2203_v53  ;;  %3467 = vmatmul.msk.bf16.gmra.mxu2 %vm944_vm1, %v3723_v39  ;;  %3500 = vmatmul.msk.bf16.gmra.mxu3 %vm944_vm1, %v3756_v48  ;;  %v3662_v48 = vld [vmem:[%s4967_s1 + $0xc8] sm:$0xff] }
 0x194   :  { %v2353_v60 = vadd.f32 %v2352_v24, %v2082_v57  ;;  %2727 = vmatpush.bf16.msrb.mxu2 %v3781_v2  ;;  %v3663_v2 = vld [vmem:[%s4967_s1 + $0xd0] sm:$0xff] }
 0x196   :  { %v1732_v5 = vpop.f32.mrf.mxu2  ;;  %v1897_v10 = vpop.f32.mrf.mxu3 }
 0x197   :  { %v1733_v13 = vadd.f32 %v4441_v44, %v1732_v5  ;;  %v1898_v6 = vadd.f32 %v4441_v44, %v1897_v10  ;;  %v1424_v8 = vpop.f32.mrf.mxu0  ;;  %v1594_v14 = vpop.f32.mrf.mxu1  ;;  %v2657_v5 = vld [vmem:[%s4969_s3 + $0x68] sm:$0xff] }
 0x198   :  { %v1425_v30 = vadd.f32 %v4441_v44, %v1424_v8  ;;  %v1595_v18 = vadd.f32 %v4441_v44, %v1594_v14  ;;  %2741 = vmatpush.msrb.mxu3 %v2657_v5  ;;  %v3697_v5 = vld [vmem:[%s4967_s1 + $0x1e0] sm:$0xff] }
 0x199   :  { %v2138_v22 = vmax.f32 %v1733_v13, 0.0  ;;  %v2204_v25 = vmax.f32 %v1898_v6, 0.0 }
 0x19a   :  { %v2015_v27 = vmax.f32 %v1425_v30, 0.0  ;;  %v2083_v33 = vmax.f32 %v1595_v18, 0.0 }
 0x19b   :  { %v2414_v31 = vadd.f32 %v2413_v63, %v2138_v22  ;;  %v2490_v24 = vadd.f32 %v2489_v0, %v2204_v25  ;;  %v3757_v0 = vld [vmem:[%s4967_s1 + $0x3c0] sm:$0xff] }
 0x19c   :  { %v2276_v32 = vadd.f32 %v2015_v27, %v2014_v26  ;;  %v2354_v10 = vadd.f32 %v2353_v60, %v2083_v33 }
 0x19e   :  { %v1734_v36 = vpop.f32.mrf.mxu2  ;;  %v1899_v39 = vpop.f32.mrf.mxu3 }
 0x19f   :  { %v1735_v52 = vadd.f32 %v4441_v44, %v1734_v36  ;;  %v1900_v53 = vadd.f32 %v4441_v44, %v1899_v39  ;;  %v1427_v57 = vpop.f32.mrf.mxu0  ;;  %v1597_v63 = vpop.f32.mrf.mxu1 }
 0x1a0   :  { %v1428_v13 = vadd.f32 %v4441_v44, %v1427_v57  ;;  %v1598_v6 = vadd.f32 %v4441_v44, %v1597_v63 }
 0x1a1   :  { %v2139_v8 = vmax.f32 %v1735_v52, 0.0  ;;  %v2205_v14 = vmax.f32 %v1900_v53, 0.0 }
 0x1a2   :  { %v2016_v30 = vmax.f32 %v1428_v13, 0.0  ;;  %v2084_v18 = vmax.f32 %v1598_v6, 0.0  ;;  %3406 = vmatmul.msk.bf16.gmra.mxu0 %vm944_vm1, %v3662_v48  ;;  %3440 = vmatmul.msk.bf16.gmra.mxu1 %vm944_vm1, %v3696_v50 }
 0x1a3   :  { %v2415_v22 = vadd.f32 %v2414_v31, %v2139_v8  ;;  %v4500_v25 = vadd.f32 %v2490_v24, %v2205_v14  ;;  %3468 = vmatmul.msk.bf16.gmra.mxu2 %vm944_vm1, %v3724_v51  ;;  %3501 = vmatmul.msk.bf16.gmra.mxu3 %vm944_vm1, %v3757_v0 }
 0x1a4   :  { %v2277_v60 = vadd.f32 %v2276_v32, %v2016_v30  ;;  %v2355_v26 = vadd.f32 %v2354_v10, %v2084_v18  ;;  %v3725_v30 = vld [vmem:[%s4967_s1 + $0x2c0] sm:$0xff]  ;;  %v3758_v18 = vld [vmem:[%s4967_s1 + $0x3c8] sm:$0xff] }
 0x1a5   :  { %4979 = vst [vmem:[#allocation9_spill] sm:$0xff] %v4500_v25 }
 0x1a6   :  { %v1737_v27 = vpop.f32.mrf.mxu2  ;;  %v1902_v33 = vpop.f32.mrf.mxu3 }
 0x1a7   :  { %v1738_v36 = vadd.f32 %v4441_v44, %v1737_v27  ;;  %v1429_v39 = vpop.f32.mrf.mxu0  ;;  %v1599_v52 = vpop.f32.mrf.mxu1  ;;  %v1903_v57 = vadd.f32 %v4441_v44, %v1902_v33 }
 0x1a8   :  { %v1430_v53 = vadd.f32 %v4441_v44, %v1429_v39  ;;  %v1600_v48 = vadd.f32 %v4441_v44, %v1599_v52 }
 0x1a9   :  { %v2140_v50 = vmax.f32 %v1738_v36, 0.0  ;;  %v2206_v10 = vmax.f32 %v1903_v57, 0.0 }
 0x1aa   :  { %v2017_v31 = vmax.f32 %v1430_v53, 0.0  ;;  %v2085_v63 = vmax.f32 %v1600_v48, 0.0 }
 0x1ab   :  { %v2416_v24 = vadd.f32 %v2415_v22, %v2140_v50 }
 0x1ac   :  { %v2278_v51 = vadd.f32 %v2277_v60, %v2017_v31  ;;  %v2356_v22 = vadd.f32 %v2355_v26, %v2085_v63  ;;  %v2656_v31 = vld [vmem:[%s4969_s3 + $0x60] sm:$0xff] }
 0x1ad   :  { %2742 = vmatpush.msrb.mxu3 %v2656_v31 }
 0x1ae   :  { %v1739_v0 = vpop.f32.mrf.mxu2  ;;  %v1904_v32 = vpop.f32.mrf.mxu3 }
 0x1af   :  { %v1740_v13 = vadd.f32 %v4441_v44, %v1739_v0  ;;  %v1905_v6 = vadd.f32 %v4441_v44, %v1904_v32  ;;  %v1432_v8 = vpop.f32.mrf.mxu0  ;;  %v1602_v14 = vpop.f32.mrf.mxu1 }
 0x1b0   :  { %v1433_v60 = vadd.f32 %v4441_v44, %v1432_v8  ;;  %v1603_v27 = vadd.f32 %v4441_v44, %v1602_v14 }
 0x1b1   :  { %v2141_v33 = vmax.f32 %v1740_v13, 0.0  ;;  %v2207_v36 = vmax.f32 %v1905_v6, 0.0 }
 0x1b2   :  { %v2018_v39 = vmax.f32 %v1433_v60, 0.0  ;;  %v2086_v52 = vmax.f32 %v1603_v27, 0.0  ;;  %3407 = vmatmul.msk.bf16.gmra.mxu0 %vm944_vm1, %v3663_v2  ;;  %3441 = vmatmul.msk.bf16.gmra.mxu1 %vm944_vm1, %v3697_v5  ;;  %v3664_v60 = vld [vmem:[%s4967_s1 + $0xd8] sm:$0xff]  ;;  %v3698_v27 = vld [vmem:[%s4967_s1 + $0x1e8] sm:$0xff] }
 0x1b3   :  { %v4526_v53 = vadd.f32 %v2416_v24, %v2141_v33  ;;  %v2498_v48 = vadd.f32 %v2207_v36, %v2206_v10  ;;  %3469 = vmatmul.msk.bf16.gmra.mxu2 %vm944_vm1, %v3725_v30  ;;  %3502 = vmatmul.msk.bf16.gmra.mxu3 %vm944_vm1, %v3758_v18 }
 0x1b4   :  { %v2279_v26 = vadd.f32 %v2278_v51, %v2018_v39  ;;  %v2357_v50 = vadd.f32 %v2356_v22, %v2086_v52 }
 0x1b5   :  { %4980 = vst [vmem:[#allocation10_spill] sm:$0xff] %v4526_v53 }
 0x1b6   :  { %v1742_v57 = vpop.f32.mrf.mxu2  ;;  %v1907_v63 = vpop.f32.mrf.mxu3 }
 0x1b7   :  { %v1908_v0 = vadd.f32 %v4441_v44, %v1907_v63  ;;  %v1434_v32 = vpop.f32.mrf.mxu0  ;;  %v1604_v2 = vpop.f32.mrf.mxu1  ;;  %v1743_v51 = vadd.f32 %v4441_v44, %v1742_v57 }
 0x1b8   :  { %v1435_v24 = vadd.f32 %v4441_v44, %v1434_v32  ;;  %v1605_v5 = vadd.f32 %v4441_v44, %v1604_v2 }
 0x1b9   :  { %v2208_v10 = vmax.f32 %v1908_v0, 0.0  ;;  %v2142_v33 = vmax.f32 %v1743_v51, 0.0 }
 0x1ba   :  { %v2019_v13 = vmax.f32 %v1435_v24, 0.0  ;;  %v2087_v6 = vmax.f32 %v1605_v5, 0.0 }
 0x1bb   :  { %v2499_v8 = vadd.f32 %v2498_v48, %v2208_v10  ;;  %v3726_v48 = vld [vmem:[%s4967_s1 + $0x2c8] sm:$0xff] }
 0x1bc   :  { %v2280_v14 = vadd.f32 %v2279_v26, %v2019_v13  ;;  %v2358_v30 = vadd.f32 %v2357_v50, %v2087_v6  ;;  %v3759_v26 = vld [vmem:[%s4967_s1 + $0x3d0] sm:$0xff]  ;;  %v3771_v6 = vld [vmem:[%s4970_s4 + $0x20] sm:$0xff] }
 0x1bd   :  { %2632 = vmatpush.bf16.msrb.mxu1 %v3771_v6 }
 0x1be   :  { %v1744_v18 = vpop.f32.mrf.mxu2  ;;  %v1909_v22 = vpop.f32.mrf.mxu3 }
 0x1bf   :  { %v1745_v36 = vadd.f32 %v4441_v44, %v1744_v18  ;;  %v1910_v39 = vadd.f32 %v4441_v44, %v1909_v22  ;;  %v1437_v52 = vpop.f32.mrf.mxu0  ;;  %v1607_v31 = vpop.f32.mrf.mxu1 }
 0x1c0   :  { %v1438_v50 = vadd.f32 %v4441_v44, %v1437_v52  ;;  %v1608_v57 = vadd.f32 %v4441_v44, %v1607_v31 }
 0x1c1   :  { %v2143_v63 = vmax.f32 %v1745_v36, 0.0  ;;  %v2209_v0 = vmax.f32 %v1910_v39, 0.0 }
 0x1c2   :  { %v2020_v32 = vmax.f32 %v1438_v50, 0.0  ;;  %v2088_v2 = vmax.f32 %v1608_v57, 0.0  ;;  %3408 = vmatmul.msk.bf16.gmra.mxu0 %vm944_vm1, %v3664_v60  ;;  %3442 = vmatmul.msk.bf16.gmra.mxu1 %vm944_vm1, %v3698_v27 }
 0x1c3   :  { %v2424_v24 = vadd.f32 %v2143_v63, %v2142_v33  ;;  %v2500_v5 = vadd.f32 %v2499_v8, %v2209_v0  ;;  %3470 = vmatmul.msk.bf16.gmra.mxu2 %vm944_vm1, %v3726_v48  ;;  %3503 = vmatmul.msk.bf16.gmra.mxu3 %vm944_vm1, %v3759_v26  ;;  %v3665_v0 = vld [vmem:[%s4967_s1 + $0xe0] sm:$0xff] }
 0x1c4   :  { %v2281_v10 = vadd.f32 %v2280_v14, %v2020_v32  ;;  %v2359_v13 = vadd.f32 %v2358_v30, %v2088_v2 }
 0x1c6   :  { %v1747_v51 = vpop.f32.mrf.mxu2  ;;  %v1912_v18 = vpop.f32.mrf.mxu3 }
 0x1c7   :  { %v1748_v22 = vadd.f32 %v4441_v44, %v1747_v51  ;;  %v1913_v60 = vadd.f32 %v4441_v44, %v1912_v18  ;;  %v1439_v27 = vpop.f32.mrf.mxu0  ;;  %v1609_v33 = vpop.f32.mrf.mxu1  ;;  %v3727_v18 = vld [vmem:[%s4967_s1 + $0x2d0] sm:$0xff] }
 0x1c8   :  { %v1440_v8 = vadd.f32 %v4441_v44, %v1439_v27  ;;  %v1610_v36 = vadd.f32 %v4441_v44, %v1609_v33 }
 0x1c9   :  { %v2144_v39 = vmax.f32 %v1748_v22, 0.0  ;;  %v2210_v14 = vmax.f32 %v1913_v60, 0.0 }
 0x1ca   :  { %v2021_v30 = vmax.f32 %v1440_v8, 0.0  ;;  %v2089_v52 = vmax.f32 %v1610_v36, 0.0 }
 0x1cb   :  { %v2425_v31 = vadd.f32 %v2424_v24, %v2144_v39  ;;  %v2501_v48 = vadd.f32 %v2500_v5, %v2210_v14  ;;  %v3760_v24 = vld [vmem:[%s4967_s1 + $0x3d8] sm:$0xff]  ;;  %v3780_v14 = vld [vmem:[%s4970_s4 + $0x68] sm:$0xff] }
 0x1cc   :  { %v2282_v26 = vadd.f32 %v2281_v10, %v2021_v30  ;;  %v2360_v50 = vadd.f32 %v2359_v13, %v2089_v52  ;;  %v2655_v30 = vld [vmem:[%s4969_s3 + $0x58] sm:$0xff]  ;;  %2728 = vmatpush.bf16.msrb.mxu2 %v3780_v14 }
 0x1cd   :  { %2743 = vmatpush.msrb.mxu3 %v2655_v30 }
 0x1ce   :  { %v1749_v57 = vpop.f32.mrf.mxu2  ;;  %v1914_v63 = vpop.f32.mrf.mxu3 }
 0x1cf   :  { %v1750_v32 = vadd.f32 %v4441_v44, %v1749_v57  ;;  %v1915_v2 = vadd.f32 %v4441_v44, %v1914_v63  ;;  %v1442_v6 = vpop.f32.mrf.mxu0  ;;  %v1612_v51 = vpop.f32.mrf.mxu1 }
 0x1d0   :  { %v1443_v5 = vadd.f32 %v4441_v44, %v1442_v6  ;;  %v1613_v10 = vadd.f32 %v4441_v44, %v1612_v51 }
 0x1d1   :  { %v2145_v13 = vmax.f32 %v1750_v32, 0.0  ;;  %v2211_v22 = vmax.f32 %v1915_v2, 0.0 }
 0x1d2   :  { %v2022_v60 = vmax.f32 %v1443_v5, 0.0  ;;  %v2090_v27 = vmax.f32 %v1613_v10, 0.0  ;;  %3409 = vmatmul.msk.bf16.gmra.mxu0 %vm944_vm1, %v3665_v0 }
 0x1d3   :  { %v2426_v33 = vadd.f32 %v2425_v31, %v2145_v13  ;;  %v2502_v8 = vadd.f32 %v2501_v48, %v2211_v22  ;;  %3471 = vmatmul.msk.bf16.gmra.mxu2 %vm944_vm1, %v3727_v18  ;;  %3504 = vmatmul.msk.bf16.gmra.mxu3 %vm944_vm1, %v3760_v24 }
 0x1d4   :  { %v2283_v36 = vadd.f32 %v2282_v26, %v2022_v60  ;;  %v2361_v39 = vadd.f32 %v2360_v50, %v2090_v27  ;;  %v3666_v60 = vld [vmem:[%s4967_s1 + $0xe8] sm:$0xff] }
 0x1d6   :  { %v1752_v52 = vpop.f32.mrf.mxu2  ;;  %v1917_v57 = vpop.f32.mrf.mxu3 }
 0x1d7   :  { %v1753_v31 = vadd.f32 %v4441_v44, %v1752_v52  ;;  %v1918_v48 = vadd.f32 %v4441_v44, %v1917_v57  ;;  %v1444_v63 = vpop.f32.mrf.mxu0  ;;  %v1614_v0 = vpop.f32.mrf.mxu1  ;;  %v3728_v57 = vld [vmem:[%s4967_s1 + $0x2d8] sm:$0xff] }
 0x1d8   :  { %v1445_v26 = vadd.f32 %v4441_v44, %v1444_v63  ;;  %v1615_v50 = vadd.f32 %v4441_v44, %v1614_v0 }
 0x1d9   :  { %v2146_v32 = vmax.f32 %v1753_v31, 0.0  ;;  %v2212_v2 = vmax.f32 %v1918_v48, 0.0 }
 0x1da   :  { %v2023_v6 = vmax.f32 %v1445_v26, 0.0  ;;  %v2091_v51 = vmax.f32 %v1615_v50, 0.0 }
 0x1db   :  { %v2427_v18 = vadd.f32 %v2426_v33, %v2146_v32  ;;  %v2503_v24 = vadd.f32 %v2502_v8, %v2212_v2  ;;  %v3761_v33 = vld [vmem:[%s4967_s1 + $0x3e0] sm:$0xff] }
 0x1dc   :  { %v2284_v5 = vadd.f32 %v2283_v36, %v2023_v6  ;;  %v2362_v10 = vadd.f32 %v2361_v39, %v2091_v51 }
 0x1de   :  { %v1754_v13 = vpop.f32.mrf.mxu2  ;;  %v1919_v22 = vpop.f32.mrf.mxu3 }
 0x1df   :  { %v1755_v27 = vadd.f32 %v4441_v44, %v1754_v13  ;;  %v1920_v14 = vadd.f32 %v4441_v44, %v1919_v22  ;;  %v1447_v30 = vpop.f32.mrf.mxu0  ;;  %v1617_v52 = vpop.f32.mrf.mxu1 }
 0x1e0   :  { %v1448_v8 = vadd.f32 %v4441_v44, %v1447_v30  ;;  %v1618_v36 = vadd.f32 %v4441_v44, %v1617_v52 }
 0x1e1   :  { %v2147_v39 = vmax.f32 %v1755_v27, 0.0  ;;  %v2213_v31 = vmax.f32 %v1920_v14, 0.0 }
 0x1e2   :  { %v2024_v48 = vmax.f32 %v1448_v8, 0.0  ;;  %v2092_v63 = vmax.f32 %v1618_v36, 0.0  ;;  %3410 = vmatmul.msk.bf16.gmra.mxu0 %vm944_vm1, %v3666_v60  ;;  %v3667_v36 = vld [vmem:[%s4967_s1 + $0xf0] sm:$0xff] }
 0x1e3   :  { %v2428_v0 = vadd.f32 %v2427_v18, %v2147_v39  ;;  %v2504_v26 = vadd.f32 %v2503_v24, %v2213_v31  ;;  %3472 = vmatmul.msk.bf16.gmra.mxu2 %vm944_vm1, %v3728_v57  ;;  %3505 = vmatmul.msk.bf16.gmra.mxu3 %vm944_vm1, %v3761_v33 }
 0x1e4   :  { %v2285_v50 = vadd.f32 %v2284_v5, %v2024_v48  ;;  %v2363_v32 = vadd.f32 %v2362_v10, %v2092_v63 }
 0x1e6   :  { %v1757_v2 = vpop.f32.mrf.mxu2  ;;  %v1922_v6 = vpop.f32.mrf.mxu3 }
 0x1e7   :  { %v1758_v51 = vadd.f32 %v4441_v44, %v1757_v2  ;;  %v1923_v13 = vadd.f32 %v4441_v44, %v1922_v6  ;;  %v1449_v22 = vpop.f32.mrf.mxu0  ;;  %v1619_v27 = vpop.f32.mrf.mxu1 }
 0x1e8   :  { %v1450_v14 = vadd.f32 %v4441_v44, %v1449_v22  ;;  %v1620_v60 = vadd.f32 %v4441_v44, %v1619_v27 }
 0x1e9   :  { %v2148_v18 = vmax.f32 %v1758_v51, 0.0  ;;  %v2214_v57 = vmax.f32 %v1923_v13, 0.0 }
 0x1ea   :  { %v2025_v24 = vmax.f32 %v1450_v14, 0.0  ;;  %v2093_v30 = vmax.f32 %v1620_v60, 0.0 }
 0x1eb   :  { %v2429_v52 = vadd.f32 %v2428_v0, %v2148_v18  ;;  %v2505_v39 = vadd.f32 %v2504_v26, %v2214_v57  ;;  %v3729_v0 = vld [vmem:[%s4967_s1 + $0x2e0] sm:$0xff] }
 0x1ec   :  { %v2286_v33 = vadd.f32 %v2285_v50, %v2025_v24  ;;  %v2364_v5 = vadd.f32 %v2363_v32, %v2093_v30  ;;  %v3762_v50 = vld [vmem:[%s4967_s1 + $0x3e8] sm:$0xff] }
 0x1ee   :  { %v1759_v10 = vpop.f32.mrf.mxu2  ;;  %v1924_v8 = vpop.f32.mrf.mxu3 }
 0x1ef   :  { %v1760_v31 = vadd.f32 %v4441_v44, %v1759_v10  ;;  %v1925_v48 = vadd.f32 %v4441_v44, %v1924_v8  ;;  %v1452_v63 = vpop.f32.mrf.mxu0  ;;  %v1622_v2 = vpop.f32.mrf.mxu1 }
 0x1f0   :  { %v1453_v32 = vadd.f32 %v4441_v44, %v1452_v63  ;;  %v1623_v6 = vadd.f32 %v4441_v44, %v1622_v2 }
 0x1f1   :  { %v2215_v51 = vmax.f32 %v1925_v48, 0.0  ;;  %v2149_v22 = vmax.f32 %v1760_v31, 0.0 }
 0x1f2   :  { %v2026_v26 = vmax.f32 %v1453_v32, 0.0  ;;  %v2094_v13 = vmax.f32 %v1623_v6, 0.0  ;;  %3411 = vmatmul.msk.bf16.gmra.mxu0 %vm944_vm1, %v3667_v36  ;;  %v3668_v6 = vld [vmem:[%s4967_s1 + $0xf8] sm:$0xff] }
 0x1f3   :  { %v2506_v27 = vadd.f32 %v2505_v39, %v2215_v51  ;;  %3473 = vmatmul.msk.bf16.gmra.mxu2 %vm944_vm1, %v3729_v0  ;;  %3506 = vmatmul.msk.bf16.gmra.mxu3 %vm944_vm1, %v3762_v50  ;;  %v2430_v30 = vadd.f32 %v2429_v52, %v2149_v22  ;;  %v3770_v52 = vld [vmem:[%s4970_s4 + $0x18] sm:$0xff] }
 0x1f4   :  { %v2287_v14 = vadd.f32 %v2286_v33, %v2026_v26  ;;  %v4626_v60 = vadd.f32 %v2364_v5, %v2094_v13  ;;  %v2654_v33 = vld [vmem:[%s4969_s3 + $0x50] sm:$0xff]  ;;  %2633 = vmatpush.bf16.msrb.mxu1 %v3770_v52 }
 0x1f5   :  { %2744 = vmatpush.msrb.mxu3 %v2654_v33 }
 0x1f6   :  { %v1762_v18 = vpop.f32.mrf.mxu2  ;;  %v1927_v24 = vpop.f32.mrf.mxu3 }
 0x1f7   :  { %v1763_v57 = vadd.f32 %v4441_v44, %v1762_v18  ;;  %v1928_v10 = vadd.f32 %v4441_v44, %v1927_v24  ;;  %v1454_v8 = vpop.f32.mrf.mxu0  ;;  %v4630_v48 = vpop.f32.mrf.mxu1 }
 0x1f8   :  { %v1455_v36 = vadd.f32 %v4441_v44, %v1454_v8 }
 0x1f9   :  { %v2150_v39 = vmax.f32 %v1763_v57, 0.0  ;;  %v2216_v31 = vmax.f32 %v1928_v10, 0.0 }
 0x1fa   :  { %v2027_v63 = vmax.f32 %v1455_v36, 0.0 }
 0x1fb   :  { %v2431_v2 = vadd.f32 %v2430_v30, %v2150_v39  ;;  %v2507_v0 = vadd.f32 %v2506_v27, %v2216_v31  ;;  %v3730_v27 = vld [vmem:[%s4967_s1 + $0x2e8] sm:$0xff] }
 0x1fc   :  { %v2288_v5 = vadd.f32 %v2287_v14, %v2027_v63  ;;  %v3763_v14 = vld [vmem:[%s4967_s1 + $0x3f0] sm:$0xff] }
 0x1fe   :  { %v1764_v50 = vpop.f32.mrf.mxu2  ;;  %v1929_v32 = vpop.f32.mrf.mxu3 }
 0x1ff   :  { %v1765_v51 = vadd.f32 %v4441_v44, %v1764_v50  ;;  %v1930_v26 = vadd.f32 %v4441_v44, %v1929_v32  ;;  %v1457_v13 = vpop.f32.mrf.mxu0  ;;  %v4644_v22 = vpop.f32.mrf.mxu1 }
 0x200   :  { %v1458_v18 = vadd.f32 %v4441_v44, %v1457_v13 }
 0x201   :  { %v2151_v24 = vmax.f32 %v1765_v51, 0.0  ;;  %v2217_v30 = vmax.f32 %v1930_v26, 0.0 }
 0x202   :  { %v2028_v57 = vmax.f32 %v1458_v18, 0.0  ;;  %3412 = vmatmul.msk.bf16.gmra.mxu0 %vm944_vm1, %v3668_v6 }
 0x203   :  { %v2432_v10 = vadd.f32 %v2431_v2, %v2151_v24  ;;  %v2508_v8 = vadd.f32 %v2507_v0, %v2217_v30  ;;  %3474 = vmatmul.msk.bf16.gmra.mxu2 %vm944_vm1, %v3730_v27  ;;  %3507 = vmatmul.msk.bf16.gmra.mxu3 %vm944_vm1, %v3763_v14 }
 0x204   :  { %v2289_v36 = vadd.f32 %v2288_v5, %v2028_v57  ;;  %v3669_v5 = vld [vmem:[%s4967_s1 + $0x100] sm:$0xff] }
 0x206   :  { %v1767_v39 = vpop.f32.mrf.mxu2  ;;  %v1932_v31 = vpop.f32.mrf.mxu3 }
 0x207   :  { %v1768_v63 = vadd.f32 %v4441_v44, %v1767_v39  ;;  %v1933_v33 = vadd.f32 %v4441_v44, %v1932_v31  ;;  %v1459_v52 = vpop.f32.mrf.mxu0  ;;  %v4658_v50 = vpop.f32.mrf.mxu1  ;;  %v3731_v39 = vld [vmem:[%s4967_s1 + $0x2f0] sm:$0xff] }
 0x208   :  { %v1460_v32 = vadd.f32 %v4441_v44, %v1459_v52 }
 0x209   :  { %v2152_v51 = vmax.f32 %v1768_v63, 0.0  ;;  %v2218_v6 = vmax.f32 %v1933_v33, 0.0 }
 0x20a   :  { %v2029_v2 = vmax.f32 %v1460_v32, 0.0 }
 0x20b   :  { %v2433_v0 = vadd.f32 %v2432_v10, %v2152_v51  ;;  %v2509_v26 = vadd.f32 %v2508_v8, %v2218_v6  ;;  %v3764_v10 = vld [vmem:[%s4967_s1 + $0x3f8] sm:$0xff] }
 0x20c   :  { %v2290_v13 = vadd.f32 %v2289_v36, %v2029_v2 }
 0x20e   :  { %v1769_v27 = vpop.f32.mrf.mxu2  ;;  %v1934_v14 = vpop.f32.mrf.mxu3 }
 0x20f   :  { %v1770_v18 = vadd.f32 %v4441_v44, %v1769_v27  ;;  %v1935_v24 = vadd.f32 %v4441_v44, %v1934_v14  ;;  %v1462_v30 = vpop.f32.mrf.mxu0  ;;  %v4666_v57 = vpop.f32.mrf.mxu1 }
 0x210   :  { %v1463_v8 = vadd.f32 %v4441_v44, %v1462_v30 }
 0x211   :  { %v2153_v36 = vmax.f32 %v1770_v18, 0.0  ;;  %v2219_v31 = vmax.f32 %v1935_v24, 0.0 }
 0x212   :  { %v2030_v63 = vmax.f32 %v1463_v8, 0.0  ;;  %3413 = vmatmul.msk.bf16.gmra.mxu0 %vm944_vm1, %v3669_v5 }
 0x213   :  { %v2434_v33 = vadd.f32 %v2433_v0, %v2153_v36  ;;  %v2510_v52 = vadd.f32 %v2509_v26, %v2219_v31  ;;  %3475 = vmatmul.msk.bf16.gmra.mxu2 %vm944_vm1, %v3731_v39  ;;  %3508 = vmatmul.msk.bf16.gmra.mxu3 %vm944_vm1, %v3764_v10  ;;  %v3779_v39 = vld [vmem:[%s4970_s4 + $0x60] sm:$0xff] }
 0x214   :  { %v2291_v32 = vadd.f32 %v2290_v13, %v2030_v63  ;;  %v2653_v13 = vld [vmem:[%s4969_s3 + $0x48] sm:$0xff]  ;;  %2729 = vmatpush.bf16.msrb.mxu2 %v3779_v39 }
 0x215   :  { %2745 = vmatpush.msrb.mxu3 %v2653_v13  ;;  %v3670_v63 = vld [vmem:[%s4967_s1 + $0x108] sm:$0xff]  ;;  %v1628_v13 = vadd.f32 %v4441_v44, %v4644_v22 }
 0x216   :  { %v1772_v51 = vpop.f32.mrf.mxu2  ;;  %v1937_v6 = vpop.f32.mrf.mxu3 }
 0x217   :  { %v1773_v2 = vadd.f32 %v4441_v44, %v1772_v51  ;;  %v1938_v27 = vadd.f32 %v4441_v44, %v1937_v6  ;;  %v1464_v14 = vpop.f32.mrf.mxu0  ;;  %v1634_v30 = vpop.f32.mrf.mxu1 }
 0x218   :  { %v1465_v18 = vadd.f32 %v4441_v44, %v1464_v14 }
 0x219   :  { %v2154_v24 = vmax.f32 %v1773_v2, 0.0  ;;  %v2220_v8 = vmax.f32 %v1938_v27, 0.0 }
 0x21a   :  { %v2031_v5 = vmax.f32 %v1465_v18, 0.0 }
 0x21b   :  { %v2435_v0 = vadd.f32 %v2434_v33, %v2154_v24  ;;  %v2511_v26 = vadd.f32 %v2510_v52, %v2220_v8 }
 0x21c   :  { %v2292_v10 = vadd.f32 %v2291_v32, %v2031_v5  ;;  %v1625_v32 = vadd.f32 %v4441_v44, %v4630_v48 }
 0x21e   :  { %v1774_v36 = vpop.f32.mrf.mxu2  ;;  %v1939_v31 = vpop.f32.mrf.mxu3  ;;  %v2095_v39 = vmax.f32 %v1625_v32, 0.0 }
 0x21f   :  { %v1775_v33 = vadd.f32 %v4441_v44, %v1774_v36  ;;  %v1940_v52 = vadd.f32 %v4441_v44, %v1939_v31  ;;  %v1467_v51 = vpop.f32.mrf.mxu0  ;;  %v1637_v6 = vpop.f32.mrf.mxu1 }
 0x220   :  { %v1468_v2 = vadd.f32 %v4441_v44, %v1467_v51 }
 0x221   :  { %v2155_v27 = vmax.f32 %v1775_v33, 0.0  ;;  %v2221_v14 = vmax.f32 %v1940_v52, 0.0 }
 0x222   :  { %v2032_v18 = vmax.f32 %v1468_v2, 0.0  ;;  %3414 = vmatmul.msk.bf16.gmra.mxu0 %vm944_vm1, %v3670_v63 }
 0x223   :  { %v2436_v24 = vadd.f32 %v2435_v0, %v2155_v27  ;;  %v2512_v8 = vadd.f32 %v2511_v26, %v2221_v14  ;;  %v2366_v0 = vadd.f32 %v4626_v60, %v2095_v39  ;;  %v2096_v26 = vmax.f32 %v1628_v13, 0.0 }
 0x224   :  { %v2293_v5 = vadd.f32 %v2292_v10, %v2032_v18  ;;  %v1630_v10 = vadd.f32 %v4441_v44, %v4658_v50 }
 0x225   :  { %v2367_v32 = vadd.f32 %v2366_v0, %v2096_v26 }
 0x226   :  { %v1777_v36 = vpop.f32.mrf.mxu2  ;;  %v1942_v31 = vpop.f32.mrf.mxu3  ;;  %v2097_v18 = vmax.f32 %v1630_v10, 0.0  ;;  %v1638_v10 = vadd.f32 %v4441_v44, %v1637_v6 }
 0x227   :  { %v1778_v25 = vadd.f32 %v4441_v44, %v1777_v36  ;;  %v1943_v33 = vadd.f32 %v4441_v44, %v1942_v31  ;;  %v1469_v52 = vpop.f32.mrf.mxu0  ;;  %v1639_v51 = vpop.f32.mrf.mxu1  ;;  %v1633_v36 = vadd.f32 %v4441_v44, %v4666_v57 }
 0x228   :  { %v1470_v48 = vadd.f32 %v4441_v44, %v1469_v52 }
 0x229   :  { %v2156_v2 = vmax.f32 %v1778_v25, 0.0  ;;  %v2222_v53 = vmax.f32 %v1943_v33, 0.0 }
 0x22a   :  { %v2033_v63 = vmax.f32 %v1470_v48, 0.0 }
 0x22b   :  { %v2437_v22 = vadd.f32 %v2436_v24, %v2156_v2  ;;  %v2513_v27 = vadd.f32 %v2512_v8, %v2222_v53  ;;  %v2368_v24 = vadd.f32 %v2367_v32, %v2097_v18  ;;  %v2098_v53 = vmax.f32 %v1633_v36, 0.0 }
 0x22c   :  { %v2294_v14 = vadd.f32 %v2293_v5, %v2033_v63  ;;  %v1635_v8 = vadd.f32 %v4441_v44, %v1634_v30 }
 0x22d   :  { %v2369_v0 = vadd.f32 %v2368_v24, %v2098_v53 }
 0x22e   :  { %v1779_v31 = vpop.f32.mrf.mxu2  ;;  %v1944_v38 = vpop.f32.mrf.mxu3  ;;  %v2099_v26 = vmax.f32 %v1635_v8, 0.0 }
 0x22f   :  { %v1780_v25 = vadd.f32 %v4441_v44, %v1779_v31  ;;  %v1945_v33 = vadd.f32 %v4441_v44, %v1944_v38  ;;  %v1472_v60 = vpop.f32.mrf.mxu0  ;;  %v1642_v39 = vpop.f32.mrf.mxu1 }
 0x230   :  { %v1473_v13 = vadd.f32 %v4441_v44, %v1472_v60  ;;  %v2370_v36 = vadd.f32 %v2369_v0, %v2099_v26  ;;  %v1643_v53 = vadd.f32 %v4441_v44, %v1642_v39  ;;  %v2652_v39 = vld [vmem:[%s4969_s3 + $0x40] sm:$0xff] }
 0x231   :  { %v2157_v50 = vmax.f32 %v1780_v25, 0.0  ;;  %v2223_v52 = vmax.f32 %v1945_v33, 0.0  ;;  %2746 = vmatpush.msrb.mxu3 %v2652_v39 }
 0x232   :  { %v2034_v5 = vmax.f32 %v1473_v13, 0.0 }
 0x233   :  { %v2438_v48 = vadd.f32 %v2437_v22, %v2157_v50  ;;  %v2514_v2 = vadd.f32 %v2513_v27, %v2223_v52  ;;  %v2100_v22 = vmax.f32 %v1638_v10, 0.0  ;;  %v1640_v27 = vadd.f32 %v4441_v44, %v1639_v51 }
 0x234   :  { %v2295_v57 = vadd.f32 %v2294_v14, %v2034_v5  ;;  %v2102_v10 = vmax.f32 %v1643_v53, 0.0 }
 0x235   :  { %v2371_v52 = vadd.f32 %v2370_v36, %v2100_v22  ;;  %v2101_v24 = vmax.f32 %v1640_v27, 0.0 }
 0x236   :  { %v1782_v63 = vpop.f32.mrf.mxu2  ;;  %v1947_v38 = vpop.f32.mrf.mxu3 }
 0x237   :  { %v1783_v31 = vadd.f32 %v4441_v44, %v1782_v63  ;;  %v1948_v60 = vadd.f32 %v4441_v44, %v1947_v38  ;;  %v1474_v25 = vpop.f32.mrf.mxu0  ;;  %v1644_v33 = vpop.f32.mrf.mxu1  ;;  %v2372_v26 = vadd.f32 %v2371_v52, %v2101_v24  ;;  %v1653_v52 = vadd.f32 %v4441_v44, %v4030_v46 }
 0x238   :  { %v1475_v32 = vadd.f32 %v4441_v44, %v1474_v25  ;;  %v1645_v0 = vadd.f32 %v4441_v44, %v1644_v33  ;;  %v1658_v46 = vadd.f32 %v4441_v44, %v4060_v1 }
 0x239   :  { %v2158_v18 = vmax.f32 %v1783_v31, 0.0  ;;  %v2224_v30 = vmax.f32 %v1948_v60, 0.0  ;;  %v2373_v22 = vadd.f32 %v2372_v26, %v2102_v10 }
 0x23a   :  { %v2035_v14 = vmax.f32 %v1475_v32, 0.0 }
 0x23b   :  { %v2439_v13 = vadd.f32 %v2438_v48, %v2158_v18  ;;  %v2515_v50 = vadd.f32 %v2514_v2, %v2224_v30  ;;  %v3769_v48 = vld [vmem:[%s4970_s4 + $0x10] sm:$0xff]  ;;  %v2103_v30 = vmax.f32 %v1645_v0, 0.0 }
 0x23c   :  { %v2296_v6 = vadd.f32 %v2295_v57, %v2035_v14  ;;  %2634 = vmatpush.bf16.msrb.mxu1 %v3769_v48 }
 0x23d   :  { %v2374_v24 = vadd.f32 %v2373_v22, %v2103_v30 }
 0x23e   :  { %v1784_v8 = vpop.f32.mrf.mxu2  ;;  %v1949_v5 = vpop.f32.mrf.mxu3 }
 0x23f   :  { %v1785_v63 = vadd.f32 %v4441_v44, %v1784_v8  ;;  %v1950_v38 = vadd.f32 %v4441_v44, %v1949_v5  ;;  %v1477_v31 = vpop.f32.mrf.mxu0  ;;  %v1647_v60 = vpop.f32.mrf.mxu1 }
 0x240   :  { %v1478_v51 = vadd.f32 %v4441_v44, %v1477_v31  ;;  %v1648_v32 = vadd.f32 %v4441_v44, %v1647_v60  ;;  %v1655_v60 = vadd.f32 %v4441_v44, %v4037_v54 }
 0x241   :  { %v2159_v2 = vmax.f32 %v1785_v63, 0.0  ;;  %v2225_v57 = vmax.f32 %v1950_v38, 0.0 }
 0x242   :  { %v2036_v25 = vmax.f32 %v1478_v51, 0.0  ;;  %v2104_v27 = vmax.f32 %v1648_v32, 0.0  ;;  %v1660_v32 = vadd.f32 %v4441_v44, %v4066_v9  ;;  %v3778_v9 = vld [vmem:[%s4970_s4 + $0x58] sm:$0xff] }
 0x243   :  { %v2440_v33 = vadd.f32 %v2439_v13, %v2159_v2  ;;  %v2516_v18 = vadd.f32 %v2515_v50, %v2225_v57  ;;  %v2106_v57 = vmax.f32 %v1653_v52, 0.0  ;;  %2730 = vmatpush.bf16.msrb.mxu2 %v3778_v9 }
 0x244   :  { %v2297_v36 = vadd.f32 %v2296_v6, %v2036_v25  ;;  %v2375_v0 = vadd.f32 %v2374_v24, %v2104_v27  ;;  %v2107_v25 = vmax.f32 %v1655_v60, 0.0  ;;  %v2108_v27 = vmax.f32 %v1658_v46, 0.0 }
 0x246   :  { %v1787_v14 = vpop.f32.mrf.mxu2  ;;  %v1952_v8 = vpop.f32.mrf.mxu3 }
 0x247   :  { %v1788_v5 = vadd.f32 %v4441_v44, %v1787_v14  ;;  %v1953_v63 = vadd.f32 %v4441_v44, %v1952_v8  ;;  %v1479_v38 = vpop.f32.mrf.mxu0  ;;  %v1649_v31 = vpop.f32.mrf.mxu1  ;;  %v2109_v8 = vmax.f32 %v1660_v32, 0.0 }
 0x248   :  { %v1480_v53 = vadd.f32 %v4441_v44, %v1479_v38  ;;  %v1650_v13 = vadd.f32 %v4441_v44, %v1649_v31 }
 0x249   :  { %v2160_v50 = vmax.f32 %v1788_v5, 0.0  ;;  %v2226_v6 = vmax.f32 %v1953_v63, 0.0 }
 0x24a   :  { %v2037_v51 = vmax.f32 %v1480_v53, 0.0  ;;  %v2105_v48 = vmax.f32 %v1650_v13, 0.0  ;;  %v2651_v53 = vld [vmem:[%s4969_s3 + $0x38] sm:$0xff] }
 0x24b   :  { %v4735_v39 = vadd.f32 %v2440_v33, %v2160_v50  ;;  %v4737_v2 = vadd.f32 %v2516_v18, %v2226_v6  ;;  %2747 = vmatpush.msrb.mxu3 %v2651_v53  ;;  %v4756_v6 = vld [vmem:[%s4971_s5] ss:$0 sm:$0xff] }
 0x24c   :  { %v2298_v26 = vadd.f32 %v2297_v36, %v2037_v51  ;;  %v2376_v10 = vadd.f32 %v2375_v0, %v2105_v48 }
 0x24e   :  { %v2377_v30 = vadd.f32 %v2376_v10, %v2106_v57  ;;  %v1789_v22 = vpop.f32.mrf.mxu2  ;;  %v4760_v10 = vpop.f32.mrf.mxu3 }
 0x24f   :  { %v1482_v54 = vpop.f32.mrf.mxu0 }
 0x250   :  { %v2378_v14 = vadd.f32 %v2377_v30, %v2107_v25  ;;  %v1483_v33 = vadd.f32 %v4441_v44, %v1482_v54 }
 0x252   :  { %v2379_v18 = vadd.f32 %v2378_v14, %v2108_v27  ;;  %v2038_v5 = vmax.f32 %v1483_v33, 0.0 }
 0x254   :  { %v4744_v63 = vadd.f32 %v2379_v18, %v2109_v8  ;;  %v2299_v38 = vadd.f32 %v2298_v26, %v2038_v5 }
 0x256   :  { %4981 = vst [vmem:[#allocation11_spill] sm:$0xff] %v4744_v63  ;;  %v1792_v1 = vpop.f32.mrf.mxu2  ;;  %v4763_v8 = vpop.f32.mrf.mxu3 }
 0x257   :  { %v1484_v36 = vpop.f32.mrf.mxu0 }
 0x258   :  { %v1485_v31 = vadd.f32 %v4441_v44, %v1484_v36 }
 0x25a   :  { %v2039_v52 = vmax.f32 %v1485_v31, 0.0  ;;  %v2650_v31 = vld [vmem:[%s4969_s3 + $0x30] sm:$0xff] }
 0x25b   :  { %2748 = vmatpush.msrb.mxu3 %v2650_v31 }
 0x25c   :  { %v2300_v24 = vadd.f32 %v2299_v38, %v2039_v52  ;;  %v3768_v38 = vld [vmem:[%s4970_s4 + $0x8] sm:$0xff] }
 0x25d   :  { %2635 = vmatpush.bf16.msrb.mxu1 %v3768_v38 }
 0x25e   :  { %v1794_v13 = vpop.f32.mrf.mxu2  ;;  %v4773_v53 = vpop.f32.mrf.mxu3 }
 0x25f   :  { %v1487_v50 = vpop.f32.mrf.mxu0 }
 0x260   :  { %v1488_v44 = vadd.f32 %v4756_v6, %v1487_v50 }
 0x262   :  { %v2040_v60 = vmax.f32 %v1488_v44, 0.0  ;;  %v2270_v44 = vrot.slane %v4447_v23, 4 }
 0x264   :  { %v2301_v0 = vadd.f32 %v2300_v24, %v2040_v60 }
 0x266   :  { %v1797_v51 = vpop.f32.mrf.mxu2 }
 0x267   :  { %v1489_v48 = vpop.f32.mrf.mxu0 }
 0x268   :  { %v1490_v57 = vadd.f32 %v4756_v6, %v1489_v48  ;;  %v1790_v48 = vadd.f32 %v4756_v6, %v1789_v22 }
 0x26a   :  { %v2041_v46 = vmax.f32 %v1490_v57, 0.0 }
 0x26c   :  { %v2302_v26 = vadd.f32 %v2301_v0, %v2041_v46  ;;  %v2271_v46 = vadd.f32 %v2270_v44, %v4447_v23 }
 0x26e   :  { %v1799_v25 = vpop.f32.mrf.mxu2 }
 0x26f   :  { %v1492_v32 = vpop.f32.mrf.mxu0 }
 0x270   :  { %v1493_v30 = vadd.f32 %v4756_v6, %v1492_v32  ;;  %v1793_v32 = vadd.f32 %v4756_v6, %v1792_v1 }
 0x272   :  { %v2042_v54 = vmax.f32 %v1493_v30, 0.0  ;;  %v2162_v38 = vmax.f32 %v1793_v32, 0.0 }
 0x274   :  { %v2303_v27 = vadd.f32 %v2302_v26, %v2042_v54  ;;  %v2161_v54 = vmax.f32 %v1790_v48, 0.0 }
 0x276   :  { %v1802_v14 = vpop.f32.mrf.mxu2 }
 0x277   :  { %v1494_v33 = vpop.f32.mrf.mxu0 }
 0x278   :  { %v1495_v18 = vadd.f32 %v4756_v6, %v1494_v33  ;;  %v2272_v33 = vrot.slane %v2271_v46, 2 }
 0x27a   :  { %v2043_v5 = vmax.f32 %v1495_v18, 0.0  ;;  %v4781_v18 = vpop.f32.mrf.mxu3  ;;  %v2273_v1 = vadd.f32 %v2272_v33, %v2271_v46 }
 0x27c   :  { %v2304_v36 = vadd.f32 %v2303_v27, %v2043_v5  ;;  %v1795_v27 = vadd.f32 %v4756_v6, %v1794_v13  ;;  %v1803_v13 = vadd.f32 %v4756_v6, %v1802_v14 }
 0x27e   :  { %v1804_v52 = vpop.f32.mrf.mxu2  ;;  %v2163_v23 = vmax.f32 %v1795_v27, 0.0  ;;  %v2166_v40 = vmax.f32 %v1803_v13, 0.0 }
 0x27f   :  { %v1497_v24 = vpop.f32.mrf.mxu0  ;;  %v1805_v32 = vadd.f32 %v4756_v6, %v1804_v52 }
 0x280   :  { %v1498_v9 = vadd.f32 %v4756_v6, %v1497_v24  ;;  %v2442_v24 = vadd.f32 %v4735_v39, %v2161_v54 }
 0x281   :  { %v2167_v33 = vmax.f32 %v1805_v32, 0.0 }
 0x282   :  { %v2044_v50 = vmax.f32 %v1498_v9, 0.0  ;;  %v1800_v9 = vadd.f32 %v4756_v6, %v1799_v25  ;;  %v2443_v48 = vadd.f32 %v2442_v24, %v2162_v38  ;;  %v4789_v54 = vpop.f32.mrf.mxu3 }
 0x284   :  { %v2305_v60 = vadd.f32 %v2304_v36, %v2044_v50  ;;  %v1798_v36 = vadd.f32 %v4756_v6, %v1797_v51  ;;  %v2444_v63 = vadd.f32 %v2443_v48, %v2163_v23  ;;  %v2274_v51 = vrot.slane %v2273_v1, 1 }
 0x286   :  { %v1807_v0 = vpop.f32.mrf.mxu2  ;;  %v2275_v38 = vadd.f32 %v2274_v51, %v2273_v1 }
 0x287   :  { %v1499_v57 = vpop.f32.mrf.mxu0  ;;  %v1808_v39 = vadd.f32 %v4756_v6, %v1807_v0 }
 0x288   :  { %v1500_v26 = vadd.f32 %v4756_v6, %v1499_v57  ;;  %v2164_v57 = vmax.f32 %v1798_v36, 0.0 }
 0x289   :  { %v2168_v52 = vmax.f32 %v1808_v39, 0.0 }
 0x28a   :  { %v2045_v30 = vmax.f32 %v1500_v26, 0.0  ;;  %v2445_v12 = vadd.f32 %v2444_v63, %v2164_v57  ;;  %v4798_v1 = vpop.f32.mrf.mxu3 }
 0x28c   :  { %v2306_v5 = vadd.f32 %v2305_v60, %v2045_v30  ;;  %v2165_v60 = vmax.f32 %v1800_v9, 0.0 }
 0x28e   :  { %v2307_v31 = vrot.slane %v2306_v5, 4  ;;  %v1809_v22 = vpop.f32.mrf.mxu2  ;;  %v2446_v27 = vadd.f32 %v2445_v12, %v2165_v60  ;;  %v1818_v12 = vadd.f32 %v4756_v6, %v4032_v47 }
 0x28f   :  { %v1502_v50 = vpop.f32.mrf.mxu0  ;;  %v1810_v14 = vadd.f32 %v4756_v6, %v1809_v22 }
 0x290   :  { %v2308_v44 = vadd.f32 %v2307_v31, %v2306_v5  ;;  %v2447_v31 = vadd.f32 %v2446_v27, %v2166_v40  ;;  %v1503_v51 = vadd.f32 %v4756_v6, %v1502_v50  ;;  %v2172_v39 = vmax.f32 %v1818_v12, 0.0 }
 0x291   :  { %v2169_v0 = vmax.f32 %v1810_v14, 0.0  ;;  %v1515_v50 = vadd.f32 %v4756_v6, %v4034_v49  ;;  %v1520_v12 = vadd.f32 %v4756_v6, %v4062_v4  ;;  %v3777_v4 = vld [vmem:[%s4970_s4 + $0x50] sm:$0xff] }
 0x292   :  { %v2309_v26 = vrot.slane %v2308_v44, 2  ;;  %v2448_v23 = vadd.f32 %v2447_v31, %v2167_v33  ;;  %v2046_v33 = vmax.f32 %v1503_v51, 0.0  ;;  %2731 = vmatpush.bf16.msrb.mxu2 %v3777_v4 }
 0x293   :  { %v2053_v49 = vmax.f32 %v1520_v12, 0.0  ;;  %v1958_v12 = vadd.f32 %v4756_v6, %v4763_v8  ;;  %v1553_v8 = vadd.f32 %v4756_v6, %v4231_v62  ;;  %v1558_v62 = vadd.f32 %v4756_v6, %v4260_v42 }
 0x294   :  { %v2310_v30 = vadd.f32 %v2309_v26, %v2308_v44  ;;  %v2449_v9 = vadd.f32 %v2448_v23, %v2168_v52  ;;  %v1820_v26 = vadd.f32 %v4756_v6, %v4039_v55  ;;  %v4812_v52 = vpop.f32.mrf.mxu3  ;;  %v1563_v42 = vadd.f32 %v4756_v6, %v4286_v29 }
 0x296   :  { %v2311_v25 = vrot.slane %v2310_v30, 1  ;;  %v1812_v46 = vpop.f32.mrf.mxu2  ;;  %v2450_v57 = vadd.f32 %v2449_v9, %v2169_v0  ;;  %v1518_v9 = vadd.f32 %v4756_v6, %v4047_v59  ;;  %v1528_v59 = vadd.f32 %v4756_v6, %v4101_v45  ;;  %v2648_v45 = vld [vmem:[%s4969_s3 + $0x20] sm:$0xff] }
 0x297   :  { %v1504_v5 = vpop.f32.mrf.mxu0  ;;  %v1813_v24 = vadd.f32 %v4756_v6, %v1812_v46  ;;  %v2173_v46 = vmax.f32 %v1820_v26, 0.0 }
 0x298   :  { %v2312_v36 = vadd.f32 %v2311_v25, %v2310_v30  ;;  %v1505_v40 = vadd.f32 %v4756_v6, %v1504_v5  ;;  %v1513_v5 = vadd.f32 %v4756_v6, %v4012_v41 }
 0x299   :  { %v2170_v44 = vmax.f32 %v1813_v24, 0.0 }
 0x29a   :  { %v4793_v63 = vsel %vm2543_vm2, %v2312_v36, %v2275_v38  ;;  %v2047_v47 = vmax.f32 %v1505_v40, 0.0  ;;  %v2050_v0 = vmax.f32 %v1513_v5, 0.0  ;;  %v1525_v40 = vadd.f32 %v4756_v6, %v4089_v28  ;;  %v3767_v28 = vld [vmem:[%s4970_s4] sm:$0xff] }
 0x29b   :  { %v2451_v60 = vadd.f32 %v2450_v57, %v2170_v44  ;;  %v2052_v57 = vmax.f32 %v1518_v9, 0.0  ;;  %2636 = vmatpush.bf16.msrb.mxu1 %v3767_v28 }
 0x29c   :  { %v2313_v55 = vadd.f32 %v2047_v47, %v2046_v33  ;;  %v2056_v47 = vmax.f32 %v1528_v59, 0.0 }
 0x29e   :  { %v1814_v48 = vpop.f32.mrf.mxu2 }
 0x29f   :  { %v1815_v22 = vadd.f32 %v4756_v6, %v1814_v48  ;;  %v1507_v13 = vpop.f32.mrf.mxu0  ;;  %v2051_v48 = vmax.f32 %v1515_v50, 0.0  ;;  %v1540_v50 = vadd.f32 %v4756_v6, %v4168_v17  ;;  %v1548_v17 = vadd.f32 %v4756_v6, %v4205_v15 }
 0x2a0   :  { %v1508_v30 = vadd.f32 %v4756_v6, %v1507_v13 }
 0x2a1   :  { %v2171_v32 = vmax.f32 %v1815_v22, 0.0  ;;  %v1523_v22 = vadd.f32 %v4756_v6, %v4075_v16  ;;  %v2649_v16 = vld [vmem:[%s4969_s3 + $0x28] sm:$0xff] }
 0x2a2   :  { %v2048_v14 = vmax.f32 %v1508_v30, 0.0  ;;  %2749 = vmatpush.msrb.mxu3 %v2649_v16  ;;  %v2055_v30 = vmax.f32 %v1525_v40, 0.0  ;;  %v2228_v40 = vmax.f32 %v1958_v12, 0.0 }
 0x2a3   :  { %v2452_v25 = vadd.f32 %v2451_v60, %v2171_v32  ;;  %v2054_v60 = vmax.f32 %v1523_v22, 0.0  ;;  %v4824_v32 = vpop.f32.mrf.mxu3 }
 0x2a4   :  { %v2314_v24 = vadd.f32 %v2313_v55, %v2048_v14  ;;  %2750 = vmatpush.msrb.mxu3 %v2648_v45  ;;  %v1535_v14 = vadd.f32 %v4756_v6, %v4142_v37  ;;  %v1538_v55 = vadd.f32 %v4756_v6, %v4153_v61  ;;  %v1955_v37 = vadd.f32 %v4756_v6, %v4760_v10 }
 0x2a5   :  { %v2453_v27 = vadd.f32 %v2452_v25, %v2172_v39  ;;  %v1530_v39 = vadd.f32 %v4756_v6, %v4116_v3  ;;  %v1550_v10 = vadd.f32 %v4756_v6, %v4220_v35  ;;  %v1555_v35 = vadd.f32 %v4756_v6, %v4246_v20 }
 0x2a6   :  { %v2059_v3 = vmax.f32 %v1535_v14, 0.0  ;;  %v2227_v22 = vmax.f32 %v1955_v37, 0.0  ;;  %v1560_v20 = vadd.f32 %v4756_v6, %v4275_v7  ;;  %v2068_v14 = vmax.f32 %v1558_v62, 0.0  ;;  %v3775_v62 = vld [vmem:[%s4970_s4 + $0x40] sm:$0xff] }
 0x2a7   :  { %v4805_v38 = vadd.f32 %v2453_v27, %v2173_v46  ;;  %v1509_v36 = vpop.f32.mrf.mxu0  ;;  %v1533_v46 = vadd.f32 %v4756_v6, %v4127_v21  ;;  %v2057_v33 = vmax.f32 %v1530_v39, 0.0  ;;  %v1543_v21 = vadd.f32 %v4756_v6, %v4179_v34 }
 0x2a8   :  { %v1510_v31 = vadd.f32 %v4756_v6, %v1509_v36  ;;  %v1960_v34 = vadd.f32 %v4756_v6, %v4773_v53  ;;  %v2518_v59 = vadd.f32 %v4737_v2, %v2227_v22  ;;  %v1965_v53 = vadd.f32 %v4756_v6, %v4789_v54 }
 0x2a9   :  { %v2058_v5 = vmax.f32 %v1533_v46, 0.0  ;;  %v2065_v4 = vmax.f32 %v1550_v10, 0.0  ;;  %v1970_v54 = vadd.f32 %v4756_v6, %v4812_v52  ;;  %v2069_v52 = vmax.f32 %v1560_v20, 0.0  ;;  %v4982_v10 = vld [vmem:[#allocation6_spill] sm:$0xff] }
 0x2aa   :  { %v2049_v23 = vmax.f32 %v1510_v31, 0.0  ;;  %v2519_v28 = vadd.f32 %v2518_v59, %v2228_v40  ;;  %v2646_v59 = vld [vmem:[%s4969_s3 + $0x10] sm:$0xff] }
 0x2ac   :  { %v2315_v44 = vadd.f32 %v2314_v24, %v2049_v23  ;;  %v1974_v24 = vpop.f32.mrf.mxu3 }
 0x2ae   :  { %v2316_v41 = vadd.f32 %v2315_v44, %v2050_v0  ;;  %v2060_v0 = vmax.f32 %v1538_v55, 0.0  ;;  %v2061_v44 = vmax.f32 %v1540_v50, 0.0  ;;  %v2233_v55 = vmax.f32 %v1970_v54, 0.0  ;;  %v4987_v54 = vld [vmem:[#allocation9_spill] sm:$0xff] }
 0x2b0   :  { %v2317_v13 = vadd.f32 %v2316_v41, %v2051_v48  ;;  %v1545_v48 = vadd.f32 %v4756_v6, %v4194_v58  ;;  %v2062_v41 = vmax.f32 %v1543_v21, 0.0  ;;  %v1963_v58 = vadd.f32 %v4756_v6, %v4781_v18 }
 0x2b1   :  { %v1968_v18 = vadd.f32 %v4756_v6, %v4798_v1  ;;  %v1973_v1 = vadd.f32 %v4756_v6, %v4824_v32  ;;  %v2070_v32 = vmax.f32 %v1563_v42, 0.0 }
 0x2b2   :  { %v2318_v26 = vadd.f32 %v2317_v13, %v2052_v57  ;;  %v2063_v13 = vmax.f32 %v1545_v48, 0.0  ;;  %v2230_v45 = vmax.f32 %v1963_v58, 0.0 }
 0x2b4   :  { %v2319_v51 = vadd.f32 %v2318_v26, %v2053_v49  ;;  %v2064_v26 = vmax.f32 %v1548_v17, 0.0 }
 0x2b6   :  { %v2320_v25 = vadd.f32 %v2319_v51, %v2054_v60  ;;  %v1977_v60 = vpop.f32.mrf.mxu3  ;;  %v2229_v51 = vmax.f32 %v1960_v34, 0.0 }
 0x2b7   :  { %v1978_v21 = vadd.f32 %v4756_v6, %v1977_v60 }
 0x2b8   :  { %v2321_v27 = vadd.f32 %v2320_v25, %v2055_v30  ;;  %v2066_v30 = vmax.f32 %v1553_v8, 0.0  ;;  %v2520_v2 = vadd.f32 %v2519_v28, %v2229_v51  ;;  %v2231_v25 = vmax.f32 %v1965_v53, 0.0  ;;  %v4983_v8 = vld [vmem:[#allocation7_spill] sm:$0xff] }
 0x2b9   :  { %v4984_v51 = vld [vmem:[#allocation11_spill] sm:$0xff] }
 0x2ba   :  { %v2322_v36 = vadd.f32 %v2321_v27, %v2056_v47  ;;  %v2067_v47 = vmax.f32 %v1555_v35, 0.0  ;;  %v2521_v27 = vadd.f32 %v2520_v2, %v2230_v45  ;;  %v2381_v53 = vrot.slane %v4984_v51, 4  ;;  %v4986_v45 = vld [vmem:[#allocation10_spill] sm:$0xff] }
 0x2bb   :  { %v2455_v2 = vrot.slane %v4805_v38, 4 }
 0x2bc   :  { %v2323_v31 = vadd.f32 %v2322_v36, %v2057_v33  ;;  %v2232_v33 = vmax.f32 %v1968_v18, 0.0  ;;  %v2418_v18 = vrot.slane %v4986_v45, 4 }
 0x2bd   :  { %v2456_v42 = vadd.f32 %v2455_v2, %v4805_v38 }
 0x2be   :  { %v2324_v23 = vadd.f32 %v2323_v31, %v2058_v5  ;;  %v2522_v5 = vadd.f32 %v2521_v27, %v2231_v25  ;;  %v1975_v31 = vadd.f32 %v4756_v6, %v1974_v24  ;;  %v1979_v7 = vpop.f32.mrf.mxu3 }
 0x2bf   :  { %v1980_v48 = vadd.f32 %v4756_v6, %v1979_v7  ;;  %v2457_v7 = vrot.slane %v2456_v42, 2 }
 0x2c0   :  { %v2325_v9 = vadd.f32 %v2324_v23, %v2059_v3  ;;  %v1565_v3 = vadd.f32 %v4756_v6, %v4301_v56  ;;  %v2523_v23 = vadd.f32 %v2522_v5, %v2232_v33 }
 0x2c2   :  { %v2326_v61 = vadd.f32 %v2325_v9, %v2060_v0  ;;  %v2234_v0 = vmax.f32 %v1973_v1, 0.0  ;;  %v1568_v9 = vadd.f32 %v4756_v6, %v4312_v19  ;;  %v2524_v37 = vadd.f32 %v2523_v23, %v2233_v55 }
 0x2c3   :  { %v2071_v24 = vmax.f32 %v1565_v3, 0.0  ;;  %v2419_v1 = vadd.f32 %v2418_v18, %v4986_v45 }
 0x2c4   :  { %v2327_v57 = vadd.f32 %v2326_v61, %v2061_v44  ;;  %v2235_v44 = vmax.f32 %v1975_v31, 0.0  ;;  %v1570_v61 = vadd.f32 %v4756_v6, %v4327_v43  ;;  %v2525_v12 = vadd.f32 %v2524_v37, %v2234_v0 }
 0x2c5   :  { %v2072_v17 = vmax.f32 %v1568_v9, 0.0  ;;  %v1578_v43 = vadd.f32 %v4756_v6, %v4983_v8 }
 0x2c6   :  { %v2328_v49 = vadd.f32 %v2327_v57, %v2062_v41  ;;  %v2236_v41 = vmax.f32 %v1978_v21, 0.0  ;;  %v1573_v57 = vadd.f32 %v4756_v6, %v4338_v11  ;;  %v2526_v34 = vadd.f32 %v2525_v12, %v2235_v44  ;;  %v2647_v11 = vld [vmem:[%s4969_s3 + $0x18] sm:$0xff] }
 0x2c7   :  { %v2073_v19 = vmax.f32 %v1570_v61, 0.0  ;;  %2751 = vmatpush.msrb.mxu3 %v2647_v11  ;;  %v2076_v25 = vmax.f32 %v1578_v43, 0.0  ;;  %v3789_v11 = vld [vmem:[%s4970_s4 + $0xb0] sm:$0xff] }
 0x2c8   :  { %v2329_v15 = vadd.f32 %v2328_v49, %v2063_v13  ;;  %v2237_v13 = vmax.f32 %v1980_v48, 0.0  ;;  %v1575_v49 = vadd.f32 %v4756_v6, %v4982_v10  ;;  %v2527_v58 = vadd.f32 %v2526_v34, %v2236_v41 }
 0x2c9   :  { %2752 = vmatpush.msrb.mxu3 %v2646_v59  ;;  %v3788_v59 = vld [vmem:[%s4970_s4 + $0xa8] sm:$0xff] }
 0x2ca   :  { %v2330_v16 = vadd.f32 %v2329_v15, %v2064_v26  ;;  %v2074_v26 = vmax.f32 %v1573_v57, 0.0  ;;  %v3776_v15 = vld [vmem:[%s4970_s4 + $0x48] sm:$0xff]  ;;  %v2075_v35 = vmax.f32 %v1575_v49, 0.0 }
 0x2cb   :  { %2732 = vmatpush.bf16.msrb.mxu2 %v3776_v15  ;;  %v2643_v15 = vld [vmem:[%s4966_s0] sm:$0xff] }
 0x2cc   :  { %v2331_v39 = vadd.f32 %v2330_v16, %v2065_v4  ;;  %v2528_v4 = vadd.f32 %v2527_v58, %v2237_v13  ;;  %v4985_v16 = vld [vmem:[#allocation8_spill] sm:$0xff] }
 0x2cd   :  { %v1580_v28 = vadd.f32 %v4756_v6, %v4985_v16  ;;  %v2644_v6 = vld [vmem:[%s4969_s3] sm:$0xff] }
 0x2ce   :  { %v2332_v46 = vadd.f32 %v2331_v39, %v2066_v30  ;;  %v2645_v39 = vld [vmem:[%s4969_s3 + $0x8] sm:$0xff]  ;;  %v2529_v27 = vrot.slane %v2528_v4, 4 }
 0x2cf   :  { %2753 = vmatpush.msrb.mxu3 %v2645_v39  ;;  %v2077_v33 = vmax.f32 %v1580_v28, 0.0  ;;  %2733 = vmatpush.bf16.msrb.mxu2 %v3775_v62  ;;  %v3784_v62 = vld [vmem:[%s4970_s4 + $0x88] sm:$0xff]  ;;  %v3783_v39 = vld [vmem:[%s4970_s4 + $0x80] sm:$0xff] }
 0x2d0   :  { %v2333_v36 = vadd.f32 %v2332_v46, %v2067_v47  ;;  %v2492_v47 = vrot.slane %v4987_v54, 4  ;;  %v2382_v46 = vadd.f32 %v2381_v53, %v4984_v51  ;;  %v2530_v31 = vadd.f32 %v2529_v27, %v2528_v4  ;;  %v3787_v51 = vld [vmem:[%s4970_s4 + $0xa0] sm:$0xff]  ;;  %v3786_v53 = vld [vmem:[%s4970_s4 + $0x98] sm:$0xff]  ;;  %v3785_v4 = vld [vmem:[%s4970_s4 + $0x90] sm:$0xff] }
 0x2d1   :  { %2754 = vmatpush.msrb.mxu3 %v2644_v6 }
 0x2d2   :  { %v2334_v50 = vadd.f32 %v2333_v36, %v2068_v14  ;;  %v2493_v36 = vadd.f32 %v2492_v47, %v4987_v54  ;;  %v2383_v55 = vrot.slane %v2382_v46, 2  ;;  %v2531_v21 = vrot.slane %v2530_v31, 2  ;;  %2755 = vmatmul.f32.vlgmr.msrb.gmra.mxu3 %v2643_v15 }
 0x2d4   :  { %v2335_v29 = vadd.f32 %v2334_v50, %v2069_v52  ;;  %v2420_v52 = vrot.slane %v2419_v1, 2  ;;  %v2494_v50 = vrot.slane %v2493_v36, 2  ;;  %v2384_v0 = vadd.f32 %v2383_v55, %v2382_v46 }
 0x2d5   :  { %v2532_v38 = vadd.f32 %v2531_v21, %v2530_v31 }
 0x2d6   :  { %v2336_v56 = vadd.f32 %v2335_v29, %v2070_v32  ;;  %v2421_v32 = vadd.f32 %v2420_v52, %v2419_v1  ;;  %v2458_v29 = vadd.f32 %v2457_v7, %v2456_v42  ;;  %v2495_v37 = vadd.f32 %v2494_v50, %v2493_v36 }
 0x2d7   :  { %v2385_v48 = vrot.slane %v2384_v0, 1  ;;  %v2533_v57 = vrot.slane %v2532_v38, 1 }
 0x2d8   :  { %v2337_v22 = vadd.f32 %v2336_v56, %v2071_v24  ;;  %v2422_v24 = vrot.slane %v2421_v32, 1  ;;  %v2459_v56 = vrot.slane %v2458_v29, 1  ;;  %v2496_v12 = vrot.slane %v2495_v37, 1 }
 0x2da   :  { %v2338_v40 = vadd.f32 %v2337_v22, %v2072_v17  ;;  %v2386_v17 = vadd.f32 %v2385_v48, %v2384_v0  ;;  %v2423_v22 = vadd.f32 %v2422_v24, %v2421_v32  ;;  %v2460_v13 = vadd.f32 %v2459_v56, %v2458_v29 }
 0x2db   :  { %v2497_v10 = vadd.f32 %v2496_v12, %v2495_v37 }
 0x2dc   :  { %v2339_v60 = vadd.f32 %v2338_v40, %v2073_v19  ;;  %v2534_v40 = vadd.f32 %v2533_v57, %v2532_v38 }
 0x2de   :  { %v2340_v30 = vadd.f32 %v2339_v60, %v2074_v26 }
 0x2e0   :  { %v2341_v20 = vadd.f32 %v2340_v30, %v2075_v35  ;;  %v3802_v35 = vld [vmem:[%s4971_s5 + $0x1] ss:$0 sm:$0xff] }
 0x2e2   :  { %v2342_v14 = vadd.f32 %v2341_v20, %v2076_v25  ;;  %v3803_v25 = vld [vmem:[%s4971_s5 + $0x2] ss:$0 sm:$0xff] }
 0x2e4   :  { %v2343_v5 = vadd.f32 %v2342_v14, %v2077_v33  ;;  %v3804_v33 = vld [vmem:[%s4971_s5 + $0x3] ss:$0 sm:$0xff] }
 0x2e6   :  { %v2344_v3 = vrot.slane %v2343_v5, 4 }
 0x2e8   :  { %v2345_v23 = vadd.f32 %v2344_v3, %v2343_v5 }
 0x2ea   :  { %v2346_v9 = vrot.slane %v2345_v23, 2 }
 0x2ec   :  { %v2347_v44 = vadd.f32 %v2346_v9, %v2345_v23 }
 0x2ee   :  { %v2348_v61 = vrot.slane %v2347_v44, 1 }
 0x2f0   :  { %v2349_v41 = vadd.f32 %v2348_v61, %v2347_v44 }
 0x2f2   :  { %v2546_v34 = vsel %vm2545_vm3, %v2349_v41, %v4793_v63  ;;  %v3790_v63 = vld [vmem:[%s4970_s4 + $0xb8] sm:$0xff] }
 0x2f3   :  { %v2548_v19 = vsel %vm2547_vm4, %v2386_v17, %v2546_v34  ;;  %2831 = vmatpush.bf16.msra.mxu1 %v3790_v63 }
 0x2f4   :  { %v2550_v49 = vsel %vm2549_vm5, %v2423_v22, %v2548_v19 }
 0x2f5   :  { %v2552_v58 = vsel %vm2551_vm6, %v2460_v13, %v2550_v49 }
 0x2f6   :  { %v2554_v26 = vsel %vm2553_vm7, %v2497_v10, %v2552_v58 }
 0x2f7   :  { %v2556_v8 = vsel %vm2555_vm8, %v2534_v40, %v2554_v26  ;;  %2832 = vmatpush.bf16.msra.mxu1 %v3789_v11 }
 0x2f8   :  { %v2561_v43 = vmul.f32 0.00390625, %v2556_v8 }
 0x2fa   :  { %v2562_v60 = vpack.c.bf16 %v2561_v43, %v2561_v43 }
 0x2fb   :  { %2833 = vmatpush.bf16.msra.mxu1 %v3788_v59 }
 0x2fc   :  { %2637 = vmatmul.bf16.vlgmr.msrb.gmra.mxu1 %v2562_v60 }
 0x2ff   :  { %2834 = vmatpush.bf16.msra.mxu1 %v3787_v51 }
 0x303   :  { %2835 = vmatpush.bf16.msra.mxu1 %v3786_v53 }
 0x307   :  { %2836 = vmatpush.bf16.msra.mxu1 %v3785_v4 }
 0x30b   :  { %2837 = vmatpush.bf16.msra.mxu1 %v3784_v62 }
 0x30f   :  { %2838 = vmatpush.bf16.msra.mxu1 %v3783_v39 }
 0x355   :  { %v2756_v2 = vpop.f32.mrf.mxu3 }
 0x379   :  { %v2638_v16 = vpop.f32.mrf.mxu1 }
 0x37a   :  { %v2639_v28 = vadd.f32 %v3802_v35, %v2638_v16 }
 0x37c   :  { %v2642_v45 = vmax.f32 %v2639_v28, 0.0 }
 0x37e   :  { %v2660_v18 = vpack.c.bf16 %v2642_v45, %v2642_v45 }
 0x380   :  { %2734 = vmatmul.bf16.vlgmr.msrb.gmra.mxu2 %v2660_v18 }
 0x381   :  { %v2640_v30 = vpop.f32.mrf.mxu1 }
 0x403   :  { %v2735_v54 = vpop.f32.mrf.mxu2 }
 0x404   :  { %v2757_v47 = vadd.f32 %v2756_v2, %v2735_v54 }
 0x406   :  { %v2761_v20 = vadd.f32 %v3803_v25, %v2757_v47 }
 0x408   :  { %v2762_v6 = vmax.f32 %v2761_v20, 0.0 }
 0x40a   :  { %v2763_v46 = vpack.c.bf16 %v2762_v6, %v2762_v6 }
 0x40b   :  { %v2737_v27 = vpop.f32.mrf.mxu2 }
 0x40c   :  { %2839 = vmatmul.bf16.vlgmr.msra.gmra.mxu1 %v2763_v46 }
 0x489   :  { %v2840_v1 = vpop.f32.mrf.mxu1 }
 0x48a   :  { %v2841_v14 = vadd.f32 %v3804_v33, %v2840_v1 }
 0x48c   :  { %2844 = vst [vmem:[#allocation3] sm:$0xff] %v2841_v14 }
 0x48d   :  { %2855 = dma.vmem_to_hbm [thread:$0]  %s2851_s23, 128, %s2853_s25, [#allocation4]  }
 0x491   :  { %v2842_v42 = vpop.f32.mrf.mxu1 }
 0x492   :  { %3831 = dma.done.wait [#allocation4], 128  }
 0x493   :  { %3832 = vsyncadd [#allocation4], 4294967168 }
 0x494   :  { %2860 = vsyncpa [#allocation4], 1 }

</bundles_post_ra>
